<compile_context>
chip_gen: v5e
topology: v5e:2x2
jax: 0.10.0
libtpu: 0.0.40
codegen_flags: <defaults>
</compile_context>

<pallas_src>
import math

import jax
import jax.numpy as jnp
from jax.experimental import pallas as pl
from jax.experimental.pallas import tpu as pltpu

# ----------------------------- synthetic config ------------------------------
VOCAB      = 128   # word embedding vocab (synthetic)
TYPE_VOCAB = 2     # token_type vocab
MAX_POS    = 16    # max position embeddings
B, S, H    = 2, 8, 32      # batch, seq, hidden
NH, HD     = 2, 16         # heads, head dim  (NH * HD == H)
INTER      = 64            # FFN intermediate size
N_LAYERS   = 2
LN_EPS     = 1e-12
BS         = B * S
H3         = 3 * H


# ------------------------------ in-kernel math --------------------------------
def _layernorm(x, g, b):
    mu = jnp.mean(x, axis=-1, keepdims=True)
    var = jnp.mean((x - mu) ** 2, axis=-1, keepdims=True)
    return (x - mu) * jax.lax.rsqrt(var + LN_EPS) * g + b


def _gelu(x):
    # TODO(synk): HF BERT uses exact (erf) GELU; tanh approximation used here
    # (reference below uses the same approximation).
    c = math.sqrt(2.0 / math.pi)
    return 0.5 * x * (1.0 + jnp.tanh(c * (x + 0.044715 * x * x * x)))


# --------------------------------- fused kernel --------------------------------
def bert_layer_kernel(x_ref, mask_ref, embg_ref, embb_ref,
                      wqkv_ref, bqkv_ref, wo_ref, bo_ref,
                      ln1g_ref, ln1b_ref,
                      w1_ref, b1_ref, w2_ref, b2_ref,
                      ln2g_ref, ln2b_ref,
                      pw_ref, pb_ref,
                      hid_ref, pool_ref):
    """One encoder layer per grid step.  hid_ref (same block for every step) carries the
    [BS, H] f32 activations across the layer axis."""
    bf16 = jnp.bfloat16
    inv_sqrt_d = 1.0 / math.sqrt(HD)
    l = pl.program_id(0)

    # ---- first grid step: embedding LayerNorm initializes the carry ----
    @pl.when(l == 0)
    def _init():
        hid_ref[...] = _layernorm(x_ref[...], embg_ref[...], embb_ref[...])

    x = hid_ref[...]                                    # [BS, H] f32 carry
    xb = x.astype(bf16)
    mask = mask_ref[...]                                # [BS, BS] additive mask (f32)

    # ---- fused QKV projection: one fat MXU matmul ----
    qkv = jnp.dot(xb, wqkv_ref[...],
                  preferred_element_type=jnp.float32) + bqkv_ref[...]      # [BS, 3H] f32

    # ---- per-head attention; contexts concatenated to lane-dense [BS, NH*HD] ----
    ctx_heads = []
    for h in range(NH):                                  # NH is tiny & static
        qh = qkv[:, h * HD:(h + 1) * HD].astype(bf16)            # [BS, HD]
        kh = qkv[:, H + h * HD:H + (h + 1) * HD].astype(bf16)    # [BS, HD]
        vh = qkv[:, 2 * H + h * HD:2 * H + (h + 1) * HD].astype(bf16)
        s = jnp.einsum('qd,kd->qk', qh, kh,
                       preferred_element_type=jnp.float32)        # [BS, BS] f32
        s = s * inv_sqrt_d + mask
        s = s - jnp.max(s, axis=-1, keepdims=True)
        p = jnp.exp(s)
        p = p * pl.reciprocal(jnp.sum(p, axis=-1, keepdims=True), approx=True)
        ctx_heads.append(jnp.dot(p.astype(bf16), vh,
                                 preferred_element_type=jnp.float32))      # [BS, HD]
    ctx = jnp.concatenate(ctx_heads, axis=-1)            # [BS, H] f32 (head concat)

    # ---- single output projection: head sum folded into the contraction dim ----
    attn = jnp.dot(ctx.astype(bf16), wo_ref[...],
                   preferred_element_type=jnp.float32) + bo_ref[...]       # [BS, H]
    h1 = _layernorm(x + attn, ln1g_ref[...], ln1b_ref[...])                # post-LN (BERT)

    # ---- feed-forward ----
    ff = jnp.dot(h1.astype(bf16), w1_ref[...],
                 preferred_element_type=jnp.float32) + b1_ref[...]         # [BS, INTER]
    ff = _gelu(ff)
    ff = jnp.dot(ff.astype(bf16), w2_ref[...],
                 preferred_element_type=jnp.float32) + b2_ref[...]         # [BS, H]
    xo = _layernorm(h1 + ff, ln2g_ref[...], ln2b_ref[...])
    hid_ref[...] = xo                                    # carry to next layer / final output

    # ---- last grid step: pooler (tanh(dense(CLS))) ----
    @pl.when(l == N_LAYERS - 1)
    def _pool():
        cls = hid_ref[pl.ds(0, B, stride=S), :]          # strided CLS-row gather [B, H]
        pooled = jnp.tanh(jnp.dot(cls.astype(bf16), pw_ref[...],
                                  preferred_element_type=jnp.float32) + pb_ref[...])
        pool_ref[...] = pooled.astype(pool_ref.dtype)


def _const_spec(shape):
    zeros = (0,) * len(shape)
    return pl.BlockSpec(shape, lambda l: zeros)


def _layer_spec(shape):
    zeros = (0,) * len(shape)
    return pl.BlockSpec((None,) + tuple(shape), lambda l: (l,) + zeros)


def fused_forward(x2d, add_mask, pk):
    out_shapes = (jax.ShapeDtypeStruct((BS, H), jnp.float32),   # last_hidden (flattened)
                  jax.ShapeDtypeStruct((B, H), jnp.float32))    # pooler_output
    grid_spec = pltpu.PrefetchScalarGridSpec(
        num_scalar_prefetch=0,
        grid=(N_LAYERS,),
        in_specs=[
            _const_spec((BS, H)),        # x2d (embedding sum)
            _const_spec((BS, BS)),       # additive mask
            _const_spec((1, H)),         # emb_ln_g
            _const_spec((1, H)),         # emb_ln_b
            _layer_spec((H, H3)),        # WQKV  [L, H, 3H]  (bf16)
            _layer_spec((1, H3)),        # BQKV  [L, 1, 3H]
            _layer_spec((H, H)),         # WO    [L, H, H]   (bf16)
            _layer_spec((1, H)),         # BO
            _layer_spec((1, H)),         # LN1G
            _layer_spec((1, H)),         # LN1B
            _layer_spec((H, INTER)),     # W1    (bf16)
            _layer_spec((1, INTER)),     # B1
            _layer_spec((INTER, H)),     # W2    (bf16)
            _layer_spec((1, H)),         # B2
            _layer_spec((1, H)),         # LN2G
            _layer_spec((1, H)),         # LN2B
            _const_spec((H, H)),         # pool_w (bf16)
            _const_spec((1, H)),         # pool_b
        ],
        out_specs=[
            _const_spec((BS, H)),        # hid carry / last_hidden_state
            _const_spec((B, H)),         # pooler_output
        ],
    )
    return pl.pallas_call(
        bert_layer_kernel,
        out_shape=out_shapes,
        grid_spec=grid_spec,
        compiler_params=pltpu.CompilerParams(
            dimension_semantics=("arbitrary",)),          # layer axis is sequential (carry)
    )(x2d, add_mask, pk["emb_ln_g"], pk["emb_ln_b"],
      pk["WQKV"], pk["BQKV"], pk["WO"], pk["BO"],
      pk["LN1G"], pk["LN1B"], pk["W1"], pk["B1"], pk["W2"], pk["B2"],
      pk["LN2G"], pk["LN2B"], pk["pool_w"], pk["pool_b"])


# ------------------------------ parameter handling ------------------------------
def init_params(key):
    def nrm(k, shape, scale=0.02):
        return scale * jax.random.normal(k, shape, dtype=jnp.float32)

    keys = jax.random.split(key, 8 + N_LAYERS)
    params = {
        "word_emb": nrm(keys[0], (VOCAB, H)),
        "pos_emb":  nrm(keys[1], (MAX_POS, H)),
        "type_emb": nrm(keys[2], (TYPE_VOCAB, H)),
        "emb_ln_g": jnp.ones((1, H), jnp.float32),
        "emb_ln_b": jnp.zeros((1, H), jnp.float32),
        "pool_w":   nrm(keys[3], (H, H)),
        "pool_b":   jnp.zeros((1, H), jnp.float32),
        "layers":   [],
    }
    for li in range(N_LAYERS):
        lk = jax.random.split(keys[8 + li], 6)
        params["layers"].append({
            "wq": nrm(lk[0], (H, H)), "bq": jnp.zeros((1, H), jnp.float32),
            "wk": nrm(lk[1], (H, H)), "bk": jnp.zeros((1, H), jnp.float32),
            "wv": nrm(lk[2], (H, H)), "bv": jnp.zeros((1, H), jnp.float32),
            "wo": nrm(lk[3], (H, H)), "bo": jnp.zeros((1, H), jnp.float32),
            "ln1_g": jnp.ones((1, H), jnp.float32), "ln1_b": jnp.zeros((1, H), jnp.float32),
            "w1": nrm(lk[4], (H, INTER)), "b1": jnp.zeros((1, INTER), jnp.float32),
            "w2": nrm(lk[5], (INTER, H)), "b2": jnp.zeros((1, H), jnp.float32),
            "ln2_g": jnp.ones((1, H), jnp.float32), "ln2_b": jnp.zeros((1, H), jnp.float32),
        })
    return params


def pack_params(params):
    """Stack per-layer weights (leading L axis for the layer grid), fuse Q/K/V into a
    single [H, 3H] slab, and cast matmul weights to bf16 (biases / LN stay f32)."""
    bf16 = jnp.bfloat16
    layers = params["layers"]

    def stack(name):
        return jnp.stack([lp[name] for lp in layers], axis=0)

    WQKV = jnp.stack(
        [jnp.concatenate([lp["wq"], lp["wk"], lp["wv"]], axis=1) for lp in layers], axis=0)
    BQKV = jnp.stack(
        [jnp.concatenate([lp["bq"], lp["bk"], lp["bv"]], axis=1) for lp in layers], axis=0)

    return {
        "word_emb": params["word_emb"],
        "pos_emb":  params["pos_emb"],
        "type_emb": params["type_emb"],
        "emb_ln_g": params["emb_ln_g"],
        "emb_ln_b": params["emb_ln_b"],
        "pool_w":   params["pool_w"].astype(bf16),
        "pool_b":   params["pool_b"],
        "WQKV": WQKV.astype(bf16),                 # [L, H, 3H]
        "BQKV": BQKV,                              # [L, 1, 3H]
        "WO": stack("wo").astype(bf16),            # [L, H, H]
        "BO": stack("bo"),                         # [L, 1, H]
        "LN1G": stack("ln1_g"), "LN1B": stack("ln1_b"),
        "W1": stack("w1").astype(bf16), "B1": stack("b1"),
        "W2": stack("w2").astype(bf16), "B2": stack("b2"),
        "LN2G": stack("ln2_g"), "LN2B": stack("ln2_b"),
    }


def build_additive_mask(attention_mask):
    """[B, S] 0/1 keep-mask -> [B*S, B*S] additive mask (0 keep / -1e9 masked).
    Block-diagonal: queries only see keys from their own batch element; padded keys
    are masked everywhere (same semantics as BERT key masking)."""
    key_keep = attention_mask.astype(jnp.float32).reshape(BS)
    batch_id = jnp.repeat(jnp.arange(B), S)
    same_batch = (batch_id[:, None] == batch_id[None, :]).astype(jnp.float32)
    keep = same_batch * key_keep[None, :]
    return (1.0 - keep) * jnp.float32(-1e9)


# --------------------------------- forward -------------------------------------
def transformer_backbone_forward(packed, input_ids, attention_mask,
                                 token_type_ids=None, task="sequence_classification"):
    # model_name in ['bert', 'muril'] path: token_type_ids required.
    assert token_type_ids is not None

    # Embedding gather (data-dependent lookup, plain-JAX glue).
    pos_ids = jnp.arange(S)
    emb = (packed["word_emb"][input_ids]
           + packed["pos_emb"][pos_ids][None, :, :]
           + packed["type_emb"][token_type_ids])                  # [B, S, H] f32
    x2d = emb.reshape(BS, H)

    add_mask = build_additive_mask(attention_mask)                # [BS, BS] f32 (tiny here)

    last_hidden, pooled = fused_forward(x2d, add_mask, packed)    # single Pallas launch

    if task == "text_classification":          # pooler_output
        return pooled
    elif task == "sequence_classification":    # last_hidden_state
        return last_hidden.reshape(B, S, H)
    else:
        raise ValueError(task)


# --------------------------- pure-JAX f32 reference -----------------------------
def reference_forward(params, input_ids, attention_mask, token_type_ids):
    def ln(x, g, b):
        mu = x.mean(-1, keepdims=True)
        var = ((x - mu) ** 2).mean(-1, keepdims=True)
        return (x - mu) / jnp.sqrt(var + LN_EPS) * g + b

    pos_ids = jnp.arange(S)
    x = (params["word_emb"][input_ids] + params["pos_emb"][pos_ids][None]
         + params["type_emb"][token_type_ids])
    x = ln(x, params["emb_ln_g"], params["emb_ln_b"])
    add_mask = (1.0 - attention_mask.astype(jnp.float32)) * -1e9          # [B, S]
    for lp in params["layers"]:
        q = x @ lp["wq"] + lp["bq"]
        k = x @ lp["wk"] + lp["bk"]
        v = x @ lp["wv"] + lp["bv"]
        qh = q.reshape(B, S, NH, HD).transpose(0, 2, 1, 3)
        kh = k.reshape(B, S, NH, HD).transpose(0, 2, 1, 3)
        vh = v.reshape(B, S, NH, HD).transpose(0, 2, 1, 3)
        s = jnp.einsum('bhqd,bhkd->bhqk', qh, kh) / math.sqrt(HD)
        s = s + add_mask[:, None, None, :]
        p = jax.nn.softmax(s, axis=-1)
        ctx = jnp.einsum('bhqk,bhkd->bhqd', p, vh).transpose(0, 2, 1, 3).reshape(B, S, H)
        attn = ctx @ lp["wo"] + lp["bo"]
        h1 = ln(x + attn, lp["ln1_g"], lp["ln1_b"])
        ff = _gelu(h1 @ lp["w1"] + lp["b1"]) @ lp["w2"] + lp["b2"]
        x = ln(h1 + ff, lp["ln2_g"], lp["ln2_b"])
    pooled = jnp.tanh(x[:, 0, :] @ params["pool_w"] + params["pool_b"])
    return x, pooled


# ----------------------------------- main ---------------------------------------
if __name__ == "__main__":
    root = jax.random.PRNGKey(0)
    k_param, k_ids = jax.random.split(root)

    params = init_params(k_param)
    packed = pack_params(params)

    input_ids = jax.random.randint(k_ids, (B, S), 0, VOCAB, dtype=jnp.int32)
    attention_mask = jnp.ones((B, S), jnp.int32).at[1, S - 2:].set(0)  # pad tail of sample 1
    token_type_ids = jnp.zeros((B, S), jnp.int32)

    # 'sequence_classification' -> last_hidden_state [B, S, H]
    last_hidden = transformer_backbone_forward(
        packed, input_ids, attention_mask, token_type_ids,
        task="sequence_classification")
    jax.block_until_ready(last_hidden)
    assert last_hidden.shape == (B, S, H)

    # 'text_classification' -> pooler_output [B, H]
    pooled = transformer_backbone_forward(
        packed, input_ids, attention_mask, token_type_ids,
        task="text_classification")
    jax.block_until_ready(pooled)
    assert pooled.shape == (B, H)

    # Validate against a pure-JAX f32 reference (bf16 MXU operands -> loose tol).
    ref_hidden, ref_pooled = reference_forward(params, input_ids, attention_mask, token_type_ids)
    assert float(jnp.max(jnp.abs(last_hidden - ref_hidden))) < 5e-2
    assert float(jnp.max(jnp.abs(pooled - ref_pooled))) < 5e-2

    print("KERNEL_OK")
</pallas_src>

<mosaic_0001>
module attributes {stable_mosaic.version = 11 : i64} {
  func.func @bert_layer_kernel(%arg0: i32, %arg1: memref<16x32xf32, #tpu.memory_space<vmem>>, %arg2: memref<16x16xf32, #tpu.memory_space<vmem>>, %arg3: memref<1x32xf32, #tpu.memory_space<vmem>>, %arg4: memref<1x32xf32, #tpu.memory_space<vmem>>, %arg5: memref<1x32x96xbf16, #tpu.memory_space<vmem>>, %arg6: memref<1x1x96xf32, #tpu.memory_space<vmem>>, %arg7: memref<1x32x32xbf16, #tpu.memory_space<vmem>>, %arg8: memref<1x1x32xf32, #tpu.memory_space<vmem>>, %arg9: memref<1x1x32xf32, #tpu.memory_space<vmem>>, %arg10: memref<1x1x32xf32, #tpu.memory_space<vmem>>, %arg11: memref<1x32x64xbf16, #tpu.memory_space<vmem>>, %arg12: memref<1x1x64xf32, #tpu.memory_space<vmem>>, %arg13: memref<1x64x32xbf16, #tpu.memory_space<vmem>>, %arg14: memref<1x1x32xf32, #tpu.memory_space<vmem>>, %arg15: memref<1x1x32xf32, #tpu.memory_space<vmem>>, %arg16: memref<1x1x32xf32, #tpu.memory_space<vmem>>, %arg17: memref<32x32xbf16, #tpu.memory_space<vmem>>, %arg18: memref<1x32xf32, #tpu.memory_space<vmem>>, %arg19: memref<16x32xf32, #tpu.memory_space<vmem>>, %arg20: memref<2x32xf32, #tpu.memory_space<vmem>>) attributes {dimension_semantics = [#tpu.dimension_semantics<arbitrary>], iteration_bounds = array<i64: 2>, scalar_prefetch = 0 : i64, scratch_operands = 0 : i64, tpu.core_type = #tpu.core_type<tc>, window_params = [{pipeline_mode = #tpu.pipeline_mode<synchronous>, transform_indices = @transform_0, window_bounds = array<i64: 16, 32>}, {pipeline_mode = #tpu.pipeline_mode<synchronous>, transform_indices = @transform_1, window_bounds = array<i64: 16, 16>}, {pipeline_mode = #tpu.pipeline_mode<synchronous>, transform_indices = @transform_2, window_bounds = array<i64: 1, 32>}, {pipeline_mode = #tpu.pipeline_mode<synchronous>, transform_indices = @transform_3, window_bounds = array<i64: 1, 32>}, {transform_indices = @transform_4, window_bounds = array<i64: 1, 32, 96>}, {transform_indices = @transform_5, window_bounds = array<i64: 1, 1, 96>}, {transform_indices = @transform_6, window_bounds = array<i64: 1, 32, 32>}, {transform_indices = @transform_7, window_bounds = array<i64: 1, 1, 32>}, {transform_indices = @transform_8, window_bounds = array<i64: 1, 1, 32>}, {transform_indices = @transform_9, window_bounds = array<i64: 1, 1, 32>}, {transform_indices = @transform_10, window_bounds = array<i64: 1, 32, 64>}, {transform_indices = @transform_11, window_bounds = array<i64: 1, 1, 64>}, {transform_indices = @transform_12, window_bounds = array<i64: 1, 64, 32>}, {transform_indices = @transform_13, window_bounds = array<i64: 1, 1, 32>}, {transform_indices = @transform_14, window_bounds = array<i64: 1, 1, 32>}, {transform_indices = @transform_15, window_bounds = array<i64: 1, 1, 32>}, {pipeline_mode = #tpu.pipeline_mode<synchronous>, transform_indices = @transform_16, window_bounds = array<i64: 32, 32>}, {pipeline_mode = #tpu.pipeline_mode<synchronous>, transform_indices = @transform_17, window_bounds = array<i64: 1, 32>}, {pipeline_mode = #tpu.pipeline_mode<synchronous>, transform_indices = @transform_18, window_bounds = array<i64: 16, 32>}, {pipeline_mode = #tpu.pipeline_mode<synchronous>, transform_indices = @transform_19, window_bounds = array<i64: 2, 32>}]} {
    %c0_i32 = arith.constant 0 : i32
    %0 = arith.cmpi eq, %arg0, %c0_i32 : i32
    %1 = arith.extui %0 : i1 to i32
    %c0_i32_0 = arith.constant 0 : i32
    %2 = arith.cmpi ne, %1, %c0_i32_0 : i32
    scf.if %2 {
      %c0_70 = arith.constant 0 : index
      %c0_71 = arith.constant 0 : index
      %153 = vector.load %arg1[%c0_70, %c0_71] : memref<16x32xf32, #tpu.memory_space<vmem>>, vector<16x32xf32>
      %c0_72 = arith.constant 0 : index
      %c0_73 = arith.constant 0 : index
      %154 = vector.load %arg3[%c0_72, %c0_73] : memref<1x32xf32, #tpu.memory_space<vmem>>, vector<1x32xf32>
      %c0_74 = arith.constant 0 : index
      %c0_75 = arith.constant 0 : index
      %155 = vector.load %arg4[%c0_74, %c0_75] : memref<1x32xf32, #tpu.memory_space<vmem>>, vector<1x32xf32>
      %cst_76 = arith.constant dense<0.000000e+00> : vector<16xf32>
      %156 = vector.multi_reduction <add>, %153, %cst_76 [1] : vector<16x32xf32> to vector<16xf32>
      %157 = vector.shape_cast %156 : vector<16xf32> to vector<16x1xf32>
      %cst_77 = arith.constant 3.200000e+01 : f32
      %158 = vector.broadcast %cst_77 : f32 to vector<16x1xf32>
      %159 = arith.divf %157, %158 : vector<16x1xf32>
      %160 = vector.broadcast %159 : vector<16x1xf32> to vector<16x32xf32>
      %161 = arith.subf %153, %160 : vector<16x32xf32>
      %162 = arith.mulf %161, %161 : vector<16x32xf32>
      %cst_78 = arith.constant dense<0.000000e+00> : vector<16xf32>
      %163 = vector.multi_reduction <add>, %162, %cst_78 [1] : vector<16x32xf32> to vector<16xf32>
      %164 = vector.shape_cast %163 : vector<16xf32> to vector<16x1xf32>
      %cst_79 = arith.constant 3.200000e+01 : f32
      %165 = vector.broadcast %cst_79 : f32 to vector<16x1xf32>
      %166 = arith.divf %164, %165 : vector<16x1xf32>
      %167 = vector.broadcast %159 : vector<16x1xf32> to vector<16x32xf32>
      %168 = arith.subf %153, %167 : vector<16x32xf32>
      %cst_80 = arith.constant 9.99999996E-13 : f32
      %169 = vector.broadcast %cst_80 : f32 to vector<16x1xf32>
      %170 = arith.addf %166, %169 : vector<16x1xf32>
      %171 = math.rsqrt %170 : vector<16x1xf32>
      %172 = vector.broadcast %171 : vector<16x1xf32> to vector<16x32xf32>
      %173 = arith.mulf %168, %172 : vector<16x32xf32>
      %174 = vector.broadcast %154 : vector<1x32xf32> to vector<16x32xf32>
      %175 = arith.mulf %173, %174 : vector<16x32xf32>
      %176 = vector.broadcast %155 : vector<1x32xf32> to vector<16x32xf32>
      %177 = arith.addf %175, %176 : vector<16x32xf32>
      %c0_81 = arith.constant 0 : index
      %c0_82 = arith.constant 0 : index
      %178 = vector.load %arg19[%c0_81, %c0_82] : memref<16x32xf32, #tpu.memory_space<vmem>>, vector<16x32xf32>
      tpu.vector_store %arg19[%c0_81, %c0_82], %177 {strides = array<i32>} : memref<16x32xf32, #tpu.memory_space<vmem>>, vector<16x32xf32>,
    } else {
    }
    %c0 = arith.constant 0 : index
    %c0_1 = arith.constant 0 : index
    %3 = vector.load %arg19[%c0, %c0_1] : memref<16x32xf32, #tpu.memory_space<vmem>>, vector<16x32xf32>
    %4 = arith.truncf %3 : vector<16x32xf32> to vector<16x32xbf16>
    %c0_2 = arith.constant 0 : index
    %c0_3 = arith.constant 0 : index
    %5 = vector.load %arg2[%c0_2, %c0_3] : memref<16x16xf32, #tpu.memory_space<vmem>>, vector<16x16xf32>
    %c0_4 = arith.constant 0 : index
    %c0_5 = arith.constant 0 : index
    %c0_6 = arith.constant 0 : index
    %6 = vector.load %arg5[%c0_4, %c0_5, %c0_6] : memref<1x32x96xbf16, #tpu.memory_space<vmem>>, vector<1x32x96xbf16>
    %7 = vector.shape_cast %6 : vector<1x32x96xbf16> to vector<32x96xbf16>
    %cst = arith.constant dense<0.000000e+00> : vector<16x96xf32>
    %8 = tpu.matmul %4, %7, %cst {dimension_numbers = #tpu.dot_dimension_numbers<[1], [0], [0], [1], [0, 0, 1, 1], [], []>} : vector<16x32xbf16>, vector<32x96xbf16>, vector<16x96xf32> -> vector<16x96xf32>
    %c0_7 = arith.constant 0 : index
    %c0_8 = arith.constant 0 : index
    %c0_9 = arith.constant 0 : index
    %9 = vector.load %arg6[%c0_7, %c0_8, %c0_9] : memref<1x1x96xf32, #tpu.memory_space<vmem>>, vector<1x1x96xf32>
    %10 = vector.shape_cast %9 : vector<1x1x96xf32> to vector<1x96xf32>
    %11 = vector.broadcast %10 : vector<1x96xf32> to vector<16x96xf32>
    %12 = arith.addf %8, %11 : vector<16x96xf32>
    %13 = vector.extract_strided_slice %12 {offsets = [0, 0], sizes = [16, 16], strides = [1, 1]} : vector<16x96xf32> to vector<16x16xf32>
    %14 = arith.truncf %13 : vector<16x16xf32> to vector<16x16xbf16>
    %15 = vector.extract_strided_slice %12 {offsets = [0, 32], sizes = [16, 16], strides = [1, 1]} : vector<16x96xf32> to vector<16x16xf32>
    %16 = arith.truncf %15 : vector<16x16xf32> to vector<16x16xbf16>
    %17 = vector.extract_strided_slice %12 {offsets = [0, 64], sizes = [16, 16], strides = [1, 1]} : vector<16x96xf32> to vector<16x16xf32>
    %18 = arith.truncf %17 : vector<16x16xf32> to vector<16x16xbf16>
    "tpu.trace_start"() <{level = 10 : i32, message = "qd,kd->qk"}> : () -> ()
    %cst_10 = arith.constant dense<0.000000e+00> : vector<16x16xf32>
    %19 = tpu.matmul %14, %16, %cst_10 {dimension_numbers = #tpu.dot_dimension_numbers<[1], [1], [0], [0], [0, 0, 1, 0], [], []>} : vector<16x16xbf16>, vector<16x16xbf16>, vector<16x16xf32> -> vector<16x16xf32>
    "tpu.trace_stop"() : () -> ()
    %cst_11 = arith.constant 2.500000e-01 : f32
    %20 = vector.broadcast %cst_11 : f32 to vector<16x16xf32>
    %21 = arith.mulf %19, %20 : vector<16x16xf32>
    %22 = arith.addf %21, %5 : vector<16x16xf32>
    %cst_12 = arith.constant dense<0xFF800000> : vector<16xf32>
    %23 = vector.multi_reduction <maximumf>, %22, %cst_12 [1] : vector<16x16xf32> to vector<16xf32>
    %24 = vector.shape_cast %23 : vector<16xf32> to vector<16x1xf32>
    %25 = vector.broadcast %24 : vector<16x1xf32> to vector<16x16xf32>
    %26 = arith.subf %22, %25 : vector<16x16xf32>
    %27 = math.exp %26 : vector<16x16xf32>
    %cst_13 = arith.constant dense<0.000000e+00> : vector<16xf32>
    %28 = vector.multi_reduction <add>, %27, %cst_13 [1] : vector<16x16xf32> to vector<16xf32>
    %29 = vector.shape_cast %28 : vector<16xf32> to vector<16x1xf32>
    %30 = tpu.reciprocal %29 {approx = true} : vector<16x1xf32> -> vector<16x1xf32>
    %31 = vector.broadcast %30 : vector<16x1xf32> to vector<16x16xf32>
    %32 = arith.mulf %27, %31 : vector<16x16xf32>
    %33 = arith.truncf %32 : vector<16x16xf32> to vector<16x16xbf16>
    %cst_14 = arith.constant dense<0.000000e+00> : vector<16x16xf32>
    %34 = tpu.matmul %33, %18, %cst_14 {dimension_numbers = #tpu.dot_dimension_numbers<[1], [0], [0], [1], [0, 0, 1, 1], [], []>} : vector<16x16xbf16>, vector<16x16xbf16>, vector<16x16xf32> -> vector<16x16xf32>
    %35 = vector.extract_strided_slice %12 {offsets = [0, 16], sizes = [16, 16], strides = [1, 1]} : vector<16x96xf32> to vector<16x16xf32>
    %36 = arith.truncf %35 : vector<16x16xf32> to vector<16x16xbf16>
    %37 = vector.extract_strided_slice %12 {offsets = [0, 48], sizes = [16, 16], strides = [1, 1]} : vector<16x96xf32> to vector<16x16xf32>
    %38 = arith.truncf %37 : vector<16x16xf32> to vector<16x16xbf16>
    %39 = vector.extract_strided_slice %12 {offsets = [0, 80], sizes = [16, 16], strides = [1, 1]} : vector<16x96xf32> to vector<16x16xf32>
    %40 = arith.truncf %39 : vector<16x16xf32> to vector<16x16xbf16>
    "tpu.trace_start"() <{level = 10 : i32, message = "qd,kd->qk"}> : () -> ()
    %cst_15 = arith.constant dense<0.000000e+00> : vector<16x16xf32>
    %41 = tpu.matmul %36, %38, %cst_15 {dimension_numbers = #tpu.dot_dimension_numbers<[1], [1], [0], [0], [0, 0, 1, 0], [], []>} : vector<16x16xbf16>, vector<16x16xbf16>, vector<16x16xf32> -> vector<16x16xf32>
    "tpu.trace_stop"() : () -> ()
    %cst_16 = arith.constant 2.500000e-01 : f32
    %42 = vector.broadcast %cst_16 : f32 to vector<16x16xf32>
    %43 = arith.mulf %41, %42 : vector<16x16xf32>
    %44 = arith.addf %43, %5 : vector<16x16xf32>
    %cst_17 = arith.constant dense<0xFF800000> : vector<16xf32>
    %45 = vector.multi_reduction <maximumf>, %44, %cst_17 [1] : vector<16x16xf32> to vector<16xf32>
    %46 = vector.shape_cast %45 : vector<16xf32> to vector<16x1xf32>
    %47 = vector.broadcast %46 : vector<16x1xf32> to vector<16x16xf32>
    %48 = arith.subf %44, %47 : vector<16x16xf32>
    %49 = math.exp %48 : vector<16x16xf32>
    %cst_18 = arith.constant dense<0.000000e+00> : vector<16xf32>
    %50 = vector.multi_reduction <add>, %49, %cst_18 [1] : vector<16x16xf32> to vector<16xf32>
    %51 = vector.shape_cast %50 : vector<16xf32> to vector<16x1xf32>
    %52 = tpu.reciprocal %51 {approx = true} : vector<16x1xf32> -> vector<16x1xf32>
    %53 = vector.broadcast %52 : vector<16x1xf32> to vector<16x16xf32>
    %54 = arith.mulf %49, %53 : vector<16x16xf32>
    %55 = arith.truncf %54 : vector<16x16xf32> to vector<16x16xbf16>
    %cst_19 = arith.constant dense<0.000000e+00> : vector<16x16xf32>
    %56 = tpu.matmul %55, %40, %cst_19 {dimension_numbers = #tpu.dot_dimension_numbers<[1], [0], [0], [1], [0, 0, 1, 1], [], []>} : vector<16x16xbf16>, vector<16x16xbf16>, vector<16x16xf32> -> vector<16x16xf32>
    %57 = tpu.concatenate %34, %56 in 1 : vector<16x16xf32>, vector<16x16xf32> -> vector<16x32xf32>
    %58 = arith.truncf %57 : vector<16x32xf32> to vector<16x32xbf16>
    %c0_20 = arith.constant 0 : index
    %c0_21 = arith.constant 0 : index
    %c0_22 = arith.constant 0 : index
    %59 = vector.load %arg7[%c0_20, %c0_21, %c0_22] : memref<1x32x32xbf16, #tpu.memory_space<vmem>>, vector<1x32x32xbf16>
    %60 = vector.shape_cast %59 : vector<1x32x32xbf16> to vector<32x32xbf16>
    %cst_23 = arith.constant dense<0.000000e+00> : vector<16x32xf32>
    %61 = tpu.matmul %58, %60, %cst_23 {dimension_numbers = #tpu.dot_dimension_numbers<[1], [0], [0], [1], [0, 0, 1, 1], [], []>} : vector<16x32xbf16>, vector<32x32xbf16>, vector<16x32xf32> -> vector<16x32xf32>
    %c0_24 = arith.constant 0 : index
    %c0_25 = arith.constant 0 : index
    %c0_26 = arith.constant 0 : index
    %62 = vector.load %arg8[%c0_24, %c0_25, %c0_26] : memref<1x1x32xf32, #tpu.memory_space<vmem>>, vector<1x1x32xf32>
    %63 = vector.shape_cast %62 : vector<1x1x32xf32> to vector<1x32xf32>
    %64 = vector.broadcast %63 : vector<1x32xf32> to vector<16x32xf32>
    %65 = arith.addf %61, %64 : vector<16x32xf32>
    %66 = arith.addf %3, %65 : vector<16x32xf32>
    %c0_27 = arith.constant 0 : index
    %c0_28 = arith.constant 0 : index
    %c0_29 = arith.constant 0 : index
    %67 = vector.load %arg9[%c0_27, %c0_28, %c0_29] : memref<1x1x32xf32, #tpu.memory_space<vmem>>, vector<1x1x32xf32>
    %68 = vector.shape_cast %67 : vector<1x1x32xf32> to vector<1x32xf32>
    %c0_30 = arith.constant 0 : index
    %c0_31 = arith.constant 0 : index
    %c0_32 = arith.constant 0 : index
    %69 = vector.load %arg10[%c0_30, %c0_31, %c0_32] : memref<1x1x32xf32, #tpu.memory_space<vmem>>, vector<1x1x32xf32>
    %70 = vector.shape_cast %69 : vector<1x1x32xf32> to vector<1x32xf32>
    %cst_33 = arith.constant dense<0.000000e+00> : vector<16xf32>
    %71 = vector.multi_reduction <add>, %66, %cst_33 [1] : vector<16x32xf32> to vector<16xf32>
    %72 = vector.shape_cast %71 : vector<16xf32> to vector<16x1xf32>
    %cst_34 = arith.constant 3.200000e+01 : f32
    %73 = vector.broadcast %cst_34 : f32 to vector<16x1xf32>
    %74 = arith.divf %72, %73 : vector<16x1xf32>
    %75 = vector.broadcast %74 : vector<16x1xf32> to vector<16x32xf32>
    %76 = arith.subf %66, %75 : vector<16x32xf32>
    %77 = arith.mulf %76, %76 : vector<16x32xf32>
    %cst_35 = arith.constant dense<0.000000e+00> : vector<16xf32>
    %78 = vector.multi_reduction <add>, %77, %cst_35 [1] : vector<16x32xf32> to vector<16xf32>
    %79 = vector.shape_cast %78 : vector<16xf32> to vector<16x1xf32>
    %cst_36 = arith.constant 3.200000e+01 : f32
    %80 = vector.broadcast %cst_36 : f32 to vector<16x1xf32>
    %81 = arith.divf %79, %80 : vector<16x1xf32>
    %82 = vector.broadcast %74 : vector<16x1xf32> to vector<16x32xf32>
    %83 = arith.subf %66, %82 : vector<16x32xf32>
    %cst_37 = arith.constant 9.99999996E-13 : f32
    %84 = vector.broadcast %cst_37 : f32 to vector<16x1xf32>
    %85 = arith.addf %81, %84 : vector<16x1xf32>
    %86 = math.rsqrt %85 : vector<16x1xf32>
    %87 = vector.broadcast %86 : vector<16x1xf32> to vector<16x32xf32>
    %88 = arith.mulf %83, %87 : vector<16x32xf32>
    %89 = vector.broadcast %68 : vector<1x32xf32> to vector<16x32xf32>
    %90 = arith.mulf %88, %89 : vector<16x32xf32>
    %91 = vector.broadcast %70 : vector<1x32xf32> to vector<16x32xf32>
    %92 = arith.addf %90, %91 : vector<16x32xf32>
    %93 = arith.truncf %92 : vector<16x32xf32> to vector<16x32xbf16>
    %c0_38 = arith.constant 0 : index
    %c0_39 = arith.constant 0 : index
    %c0_40 = arith.constant 0 : index
    %94 = vector.load %arg11[%c0_38, %c0_39, %c0_40] : memref<1x32x64xbf16, #tpu.memory_space<vmem>>, vector<1x32x64xbf16>
    %95 = vector.shape_cast %94 : vector<1x32x64xbf16> to vector<32x64xbf16>
    %cst_41 = arith.constant dense<0.000000e+00> : vector<16x64xf32>
    %96 = tpu.matmul %93, %95, %cst_41 {dimension_numbers = #tpu.dot_dimension_numbers<[1], [0], [0], [1], [0, 0, 1, 1], [], []>} : vector<16x32xbf16>, vector<32x64xbf16>, vector<16x64xf32> -> vector<16x64xf32>
    %c0_42 = arith.constant 0 : index
    %c0_43 = arith.constant 0 : index
    %c0_44 = arith.constant 0 : index
    %97 = vector.load %arg12[%c0_42, %c0_43, %c0_44] : memref<1x1x64xf32, #tpu.memory_space<vmem>>, vector<1x1x64xf32>
    %98 = vector.shape_cast %97 : vector<1x1x64xf32> to vector<1x64xf32>
    %99 = vector.broadcast %98 : vector<1x64xf32> to vector<16x64xf32>
    %100 = arith.addf %96, %99 : vector<16x64xf32>
    %cst_45 = arith.constant 5.000000e-01 : f32
    %101 = vector.broadcast %cst_45 : f32 to vector<16x64xf32>
    %102 = arith.mulf %101, %100 : vector<16x64xf32>
    %cst_46 = arith.constant 4.471500e-02 : f32
    %103 = vector.broadcast %cst_46 : f32 to vector<16x64xf32>
    %104 = arith.mulf %103, %100 : vector<16x64xf32>
    %105 = arith.mulf %104, %100 : vector<16x64xf32>
    %106 = arith.mulf %105, %100 : vector<16x64xf32>
    %107 = arith.addf %100, %106 : vector<16x64xf32>
    %cst_47 = arith.constant 0.797884583 : f32
    %108 = vector.broadcast %cst_47 : f32 to vector<16x64xf32>
    %109 = arith.mulf %108, %107 : vector<16x64xf32>
    %110 = math.tanh %109 : vector<16x64xf32>
    %cst_48 = arith.constant 1.000000e+00 : f32
    %111 = vector.broadcast %cst_48 : f32 to vector<16x64xf32>
    %112 = arith.addf %111, %110 : vector<16x64xf32>
    %113 = arith.mulf %102, %112 : vector<16x64xf32>
    %114 = arith.truncf %113 : vector<16x64xf32> to vector<16x64xbf16>
    %c0_49 = arith.constant 0 : index
    %c0_50 = arith.constant 0 : index
    %c0_51 = arith.constant 0 : index
    %115 = vector.load %arg13[%c0_49, %c0_50, %c0_51] : memref<1x64x32xbf16, #tpu.memory_space<vmem>>, vector<1x64x32xbf16>
    %116 = vector.shape_cast %115 : vector<1x64x32xbf16> to vector<64x32xbf16>
    %cst_52 = arith.constant dense<0.000000e+00> : vector<16x32xf32>
    %117 = tpu.matmul %114, %116, %cst_52 {dimension_numbers = #tpu.dot_dimension_numbers<[1], [0], [0], [1], [0, 0, 1, 1], [], []>} : vector<16x64xbf16>, vector<64x32xbf16>, vector<16x32xf32> -> vector<16x32xf32>
    %c0_53 = arith.constant 0 : index
    %c0_54 = arith.constant 0 : index
    %c0_55 = arith.constant 0 : index
    %118 = vector.load %arg14[%c0_53, %c0_54, %c0_55] : memref<1x1x32xf32, #tpu.memory_space<vmem>>, vector<1x1x32xf32>
    %119 = vector.shape_cast %118 : vector<1x1x32xf32> to vector<1x32xf32>
    %120 = vector.broadcast %119 : vector<1x32xf32> to vector<16x32xf32>
    %121 = arith.addf %117, %120 : vector<16x32xf32>
    %122 = arith.addf %92, %121 : vector<16x32xf32>
    %c0_56 = arith.constant 0 : index
    %c0_57 = arith.constant 0 : index
    %c0_58 = arith.constant 0 : index
    %123 = vector.load %arg15[%c0_56, %c0_57, %c0_58] : memref<1x1x32xf32, #tpu.memory_space<vmem>>, vector<1x1x32xf32>
    %124 = vector.shape_cast %123 : vector<1x1x32xf32> to vector<1x32xf32>
    %c0_59 = arith.constant 0 : index
    %c0_60 = arith.constant 0 : index
    %c0_61 = arith.constant 0 : index
    %125 = vector.load %arg16[%c0_59, %c0_60, %c0_61] : memref<1x1x32xf32, #tpu.memory_space<vmem>>, vector<1x1x32xf32>
    %126 = vector.shape_cast %125 : vector<1x1x32xf32> to vector<1x32xf32>
    %cst_62 = arith.constant dense<0.000000e+00> : vector<16xf32>
    %127 = vector.multi_reduction <add>, %122, %cst_62 [1] : vector<16x32xf32> to vector<16xf32>
    %128 = vector.shape_cast %127 : vector<16xf32> to vector<16x1xf32>
    %cst_63 = arith.constant 3.200000e+01 : f32
    %129 = vector.broadcast %cst_63 : f32 to vector<16x1xf32>
    %130 = arith.divf %128, %129 : vector<16x1xf32>
    %131 = vector.broadcast %130 : vector<16x1xf32> to vector<16x32xf32>
    %132 = arith.subf %122, %131 : vector<16x32xf32>
    %133 = arith.mulf %132, %132 : vector<16x32xf32>
    %cst_64 = arith.constant dense<0.000000e+00> : vector<16xf32>
    %134 = vector.multi_reduction <add>, %133, %cst_64 [1] : vector<16x32xf32> to vector<16xf32>
    %135 = vector.shape_cast %134 : vector<16xf32> to vector<16x1xf32>
    %cst_65 = arith.constant 3.200000e+01 : f32
    %136 = vector.broadcast %cst_65 : f32 to vector<16x1xf32>
    %137 = arith.divf %135, %136 : vector<16x1xf32>
    %138 = vector.broadcast %130 : vector<16x1xf32> to vector<16x32xf32>
    %139 = arith.subf %122, %138 : vector<16x32xf32>
    %cst_66 = arith.constant 9.99999996E-13 : f32
    %140 = vector.broadcast %cst_66 : f32 to vector<16x1xf32>
    %141 = arith.addf %137, %140 : vector<16x1xf32>
    %142 = math.rsqrt %141 : vector<16x1xf32>
    %143 = vector.broadcast %142 : vector<16x1xf32> to vector<16x32xf32>
    %144 = arith.mulf %139, %143 : vector<16x32xf32>
    %145 = vector.broadcast %124 : vector<1x32xf32> to vector<16x32xf32>
    %146 = arith.mulf %144, %145 : vector<16x32xf32>
    %147 = vector.broadcast %126 : vector<1x32xf32> to vector<16x32xf32>
    %148 = arith.addf %146, %147 : vector<16x32xf32>
    %c0_67 = arith.constant 0 : index
    %c0_68 = arith.constant 0 : index
    %149 = vector.load %arg19[%c0_67, %c0_68] : memref<16x32xf32, #tpu.memory_space<vmem>>, vector<16x32xf32>
    tpu.vector_store %arg19[%c0_67, %c0_68], %148 {strides = array<i32>} : memref<16x32xf32, #tpu.memory_space<vmem>>, vector<16x32xf32>,
    %c1_i32 = arith.constant 1 : i32
    %150 = arith.cmpi eq, %arg0, %c1_i32 : i32
    %151 = arith.extui %150 : i1 to i32
    %c0_i32_69 = arith.constant 0 : i32
    %152 = arith.cmpi ne, %151, %c0_i32_69 : i32
    scf.if %152 {
      %c0_70 = arith.constant 0 : index
      %c0_71 = arith.constant 0 : index
      %153 = tpu.strided_load %arg19[%c0_70, %c0_71] {strides = array<i32: 8, 1>} : memref<16x32xf32, #tpu.memory_space<vmem>>, vector<2x32xf32>
      %154 = arith.truncf %153 : vector<2x32xf32> to vector<2x32xbf16>
      %c0_72 = arith.constant 0 : index
      %c0_73 = arith.constant 0 : index
      %155 = vector.load %arg17[%c0_72, %c0_73] : memref<32x32xbf16, #tpu.memory_space<vmem>>, vector<32x32xbf16>
      %cst_74 = arith.constant dense<0.000000e+00> : vector<2x32xf32>
      %156 = tpu.matmul %154, %155, %cst_74 {dimension_numbers = #tpu.dot_dimension_numbers<[1], [0], [0], [1], [0, 0, 1, 1], [], []>} : vector<2x32xbf16>, vector<32x32xbf16>, vector<2x32xf32> -> vector<2x32xf32>
      %c0_75 = arith.constant 0 : index
      %c0_76 = arith.constant 0 : index
      %157 = vector.load %arg18[%c0_75, %c0_76] : memref<1x32xf32, #tpu.memory_space<vmem>>, vector<1x32xf32>
      %158 = vector.broadcast %157 : vector<1x32xf32> to vector<2x32xf32>
      %159 = arith.addf %156, %158 : vector<2x32xf32>
      %160 = math.tanh %159 : vector<2x32xf32>
      %c0_77 = arith.constant 0 : index
      %c0_78 = arith.constant 0 : index
      %161 = vector.load %arg20[%c0_77, %c0_78] : memref<2x32xf32, #tpu.memory_space<vmem>>, vector<2x32xf32>
      tpu.vector_store %arg20[%c0_77, %c0_78], %160 {strides = array<i32>} : memref<2x32xf32, #tpu.memory_space<vmem>>, vector<2x32xf32>,
    } else {
    }
    return
  }
  func.func @transform_0(%arg0: i32) -> (i32, i32) {
    %c0_i32 = arith.constant 0 : i32
    %c0_i32_0 = arith.constant 0 : i32
    %c0_i32_1 = arith.constant 0 : i32
    return %c0_i32, %c0_i32_0 : i32, i32
  }
  func.func @transform_1(%arg0: i32) -> (i32, i32) {
    %c0_i32 = arith.constant 0 : i32
    %c0_i32_0 = arith.constant 0 : i32
    %c0_i32_1 = arith.constant 0 : i32
    return %c0_i32, %c0_i32_0 : i32, i32
  }
  func.func @transform_2(%arg0: i32) -> (i32, i32) {
    %c0_i32 = arith.constant 0 : i32
    %c0_i32_0 = arith.constant 0 : i32
    %c0_i32_1 = arith.constant 0 : i32
    return %c0_i32, %c0_i32_0 : i32, i32
  }
  func.func @transform_3(%arg0: i32) -> (i32, i32) {
    %c0_i32 = arith.constant 0 : i32
    %c0_i32_0 = arith.constant 0 : i32
    %c0_i32_1 = arith.constant 0 : i32
    return %c0_i32, %c0_i32_0 : i32, i32
  }
  func.func @transform_4(%arg0: i32) -> (i32, i32, i32) {
    %c0_i32 = arith.constant 0 : i32
    %c0_i32_0 = arith.constant 0 : i32
    %c0_i32_1 = arith.constant 0 : i32
    return %arg0, %c0_i32, %c0_i32_0 : i32, i32, i32
  }
  func.func @transform_5(%arg0: i32) -> (i32, i32, i32) {
    %c0_i32 = arith.constant 0 : i32
    %c0_i32_0 = arith.constant 0 : i32
    %c0_i32_1 = arith.constant 0 : i32
    return %arg0, %c0_i32, %c0_i32_0 : i32, i32, i32
  }
  func.func @transform_6(%arg0: i32) -> (i32, i32, i32) {
    %c0_i32 = arith.constant 0 : i32
    %c0_i32_0 = arith.constant 0 : i32
    %c0_i32_1 = arith.constant 0 : i32
    return %arg0, %c0_i32, %c0_i32_0 : i32, i32, i32
  }
  func.func @transform_7(%arg0: i32) -> (i32, i32, i32) {
    %c0_i32 = arith.constant 0 : i32
    %c0_i32_0 = arith.constant 0 : i32
    %c0_i32_1 = arith.constant 0 : i32
    return %arg0, %c0_i32, %c0_i32_0 : i32, i32, i32
  }
  func.func @transform_8(%arg0: i32) -> (i32, i32, i32) {
    %c0_i32 = arith.constant 0 : i32
    %c0_i32_0 = arith.constant 0 : i32
    %c0_i32_1 = arith.constant 0 : i32
    return %arg0, %c0_i32, %c0_i32_0 : i32, i32, i32
  }
  func.func @transform_9(%arg0: i32) -> (i32, i32, i32) {
    %c0_i32 = arith.constant 0 : i32
    %c0_i32_0 = arith.constant 0 : i32
    %c0_i32_1 = arith.constant 0 : i32
    return %arg0, %c0_i32, %c0_i32_0 : i32, i32, i32
  }
  func.func @transform_10(%arg0: i32) -> (i32, i32, i32) {
    %c0_i32 = arith.constant 0 : i32
    %c0_i32_0 = arith.constant 0 : i32
    %c0_i32_1 = arith.constant 0 : i32
    return %arg0, %c0_i32, %c0_i32_0 : i32, i32, i32
  }
  func.func @transform_11(%arg0: i32) -> (i32, i32, i32) {
    %c0_i32 = arith.constant 0 : i32
    %c0_i32_0 = arith.constant 0 : i32
    %c0_i32_1 = arith.constant 0 : i32
    return %arg0, %c0_i32, %c0_i32_0 : i32, i32, i32
  }
  func.func @transform_12(%arg0: i32) -> (i32, i32, i32) {
    %c0_i32 = arith.constant 0 : i32
    %c0_i32_0 = arith.constant 0 : i32
    %c0_i32_1 = arith.constant 0 : i32
    return %arg0, %c0_i32, %c0_i32_0 : i32, i32, i32
  }
  func.func @transform_13(%arg0: i32) -> (i32, i32, i32) {
    %c0_i32 = arith.constant 0 : i32
    %c0_i32_0 = arith.constant 0 : i32
    %c0_i32_1 = arith.constant 0 : i32
    return %arg0, %c0_i32, %c0_i32_0 : i32, i32, i32
  }
  func.func @transform_14(%arg0: i32) -> (i32, i32, i32) {
    %c0_i32 = arith.constant 0 : i32
    %c0_i32_0 = arith.constant 0 : i32
    %c0_i32_1 = arith.constant 0 : i32
    return %arg0, %c0_i32, %c0_i32_0 : i32, i32, i32
  }
  func.func @transform_15(%arg0: i32) -> (i32, i32, i32) {
    %c0_i32 = arith.constant 0 : i32
    %c0_i32_0 = arith.constant 0 : i32
    %c0_i32_1 = arith.constant 0 : i32
    return %arg0, %c0_i32, %c0_i32_0 : i32, i32, i32
  }
  func.func @transform_16(%arg0: i32) -> (i32, i32) {
    %c0_i32 = arith.constant 0 : i32
    %c0_i32_0 = arith.constant 0 : i32
    %c0_i32_1 = arith.constant 0 : i32
    return %c0_i32, %c0_i32_0 : i32, i32
  }
  func.func @transform_17(%arg0: i32) -> (i32, i32) {
    %c0_i32 = arith.constant 0 : i32
    %c0_i32_0 = arith.constant 0 : i32
    %c0_i32_1 = arith.constant 0 : i32
    return %c0_i32, %c0_i32_0 : i32, i32
  }
  func.func @transform_18(%arg0: i32) -> (i32, i32) {
    %c0_i32 = arith.constant 0 : i32
    %c0_i32_0 = arith.constant 0 : i32
    %c0_i32_1 = arith.constant 0 : i32
    return %c0_i32, %c0_i32_0 : i32, i32
  }
  func.func @transform_19(%arg0: i32) -> (i32, i32) {
    %c0_i32 = arith.constant 0 : i32
    %c0_i32_0 = arith.constant 0 : i32
    %c0_i32_1 = arith.constant 0 : i32
    return %c0_i32, %c0_i32_0 : i32, i32
  }
}

</mosaic_0001>

<bundles_post_ra>
// kernel: tpu_custom_call.1
= control target key start
LH: loop header
LB: loop body
LE: loop exit
PB: predicated region body
PF: predicated region fallthrough
CT: control target
= control target key end

     0   :  { %s2712_s0 = inlined_call_operand.hbm [shape: f32[16,32], index: 0, kind: input, shape index: {}]   ;;  %s2713_s1 = inlined_call_operand.hbm [shape: f32[16,16], index: 1, kind: input, shape index: {}]   ;;  %s2714_s2 = inlined_call_operand.vmem [shape: f32[1,32], index: 2, kind: input, shape index: {}]   ;;  %s2715_s3 = inlined_call_operand.hbm [shape: f32[1,32], index: 3, kind: input, shape index: {}]   ;;  %s2716_s4 = inlined_call_operand.vmem [shape: bf16[2,32,96], index: 4, kind: input, shape index: {}]   ;;  %s2717_s5 = inlined_call_operand.vmem [shape: f32[2,1,96], index: 5, kind: input, shape index: {}]   ;;  %s2718_s6 = inlined_call_operand.vmem [shape: bf16[2,32,32], index: 6, kind: input, shape index: {}]   ;;  %s2719_s7 = inlined_call_operand.vmem [shape: f32[2,1,32], index: 7, kind: input, shape index: {}]   ;;  %s2720_s8 = inlined_call_operand.vmem [shape: f32[2,1,32], index: 8, kind: input, shape index: {}]   ;;  %s2721_s9 = inlined_call_operand.hbm [shape: f32[2,1,32], index: 9, kind: input, shape index: {}]   ;;  %s2722_s10 = inlined_call_operand.vmem [shape: bf16[2,32,64], index: 10, kind: input, shape index: {}]   ;;  %s2723_s11 = inlined_call_operand.vmem [shape: f32[2,1,64], index: 11, kind: input, shape index: {}]   ;;  %s2724_s12 = inlined_call_operand.vmem [shape: bf16[2,64,32], index: 12, kind: input, shape index: {}]   ;;  %s2725_s13 = inlined_call_operand.vmem [shape: f32[2,1,32], index: 13, kind: input, shape index: {}]   ;;  %s2726_s14 = inlined_call_operand.vmem [shape: f32[2,1,32], index: 14, kind: input, shape index: {}]   ;;  %s2727_s15 = inlined_call_operand.hbm [shape: f32[2,1,32], index: 15, kind: input, shape index: {}]   ;;  %s2728_s16 = inlined_call_operand.hbm [shape: bf16[32,32], index: 16, kind: input, shape index: {}]   ;;  %s2729_s17 = inlined_call_operand.vmem [shape: f32[1,32], index: 17, kind: input, shape index: {}]   ;;  %s2730_s18 = inlined_call_operand.hbm [shape: f32[16,32], index: 18, kind: output, shape index: {0}]   ;;  %s2731_s19 = inlined_call_operand.hbm [shape: f32[2,32], index: 19, kind: output, shape index: {1}]  }
   0x1   :  { %2738 = sst [smem:[#allocation25_spill]] %s2712_s0 }
   0x2   :  { %2739 = sst [smem:[#allocation26_spill]] %s2713_s1 }
   0x3   :  { %2740 = sst [smem:[#allocation27_spill]] %s2714_s2 }
   0x4   :  { %2741 = sst [smem:[#allocation28_spill]] %s2715_s3 }
   0x5   :  { %2742 = sst [smem:[#allocation29_spill]] %s2716_s4 }
   0x6   :  { %2743 = sst [smem:[#allocation30_spill]] %s2718_s6 }
   0x7   :  { %2744 = sst [smem:[#allocation31_spill]] %s2721_s9 }
   0x8   :  { %2745 = sst [smem:[#allocation32_spill]] %s2722_s10 }
   0x9   :  { %2746 = sst [smem:[#allocation33_spill]] %s2723_s11 }
   0xa   :  { %2747 = sst [smem:[#allocation34_spill]] %s2724_s12 }
   0xb   :  { %2748 = sst [smem:[#allocation35_spill]] %s2725_s13 }
   0xc   :  { %2749 = sst [smem:[#allocation36_spill]] %s2726_s14 }
   0xd   :  { %2750 = sst [smem:[#allocation37_spill]] %s2727_s15 }
   0xe   :  { %2751 = sst [smem:[#allocation38_spill]] %s2728_s16 }
   0xf   :  { %2752 = sst [smem:[#allocation39_spill]] %s2729_s17 }
  0x10   :  { %2753 = sst [smem:[#allocation40_spill]] %s2730_s18 }
  0x11   :  { %2754 = sst [smem:[#allocation41_spill]] %s2731_s19 }
  0x12   :  { %25 = vsyncpa [#allocation3], 0 }
  0x13   :  { %26 = vsyncpa [#allocation6], 0 }
  0x14   :  { %27 = vsyncpa [#allocation9], 0 }
  0x15   :  { %29 = vsyncpa [#allocation9 + $0x1], 0 }
  0x16   :  { %30 = vsyncpa [#allocation12], 0 }
  0x17   :  { %31 = vsyncpa [#allocation4], 0 }
  0x18   :  { %32 = vsyncpa [#allocation15], 0  ;;  %s2372_s0 = smov 0   ;;  %s2374_s30 = smov 0  }
  0x19   :  { %s2376_s20 = smov 0   ;;  %s2378_s21 = smov 0  }
  0x1a LB: > { %2755 = sst [smem:[#allocation22_spill]] %s2246_s20  ;;  %s2391_s1 = sadd.s32 4294967295, %s2250_s21   ;;  %s2250_s21 = sphi %s2378_s21, %s2788_s21   ;;  %s2246_s20 = sphi %s2376_s20, %s2790_s20   ;;  %s2242_s30 = sphi %s2374_s30, %s2792_s30   ;;  %s2238_s0 = sphi %s2372_s0, %s2791_s0  }
  0x1b   : > { %p1693_p0 = scmp.ge.s32.totalorder %s2250_s21, 1  ;;  %p273_p1 = scmp.eq.s32.totalorder %s2391_s1, 0 }
  0x1c   : > { %p523_p2 = scmp.lt.s32.totalorder %s2250_s21, 3  ;;  %p1694_p3 = scmp.ne.s32.totalorder %s2391_s1, 0 }
  0x1d   : > { %s2756_s23 = sld [smem:[#allocation26_spill]]  ;;  %s2252_s3 = smov [#allocation5]  }
  0x1e   : > { %p2400_p4 = pnand %p1693_p0, %p523_p2  ;;  %s550_s26 = sshll.u32 %s2252_s3, 4  ;;  %s551_s26 = int_to_ptr.vmem [resolvable:$true] %s550_s26 }
  0x1f   : > { %s2732_s28 = smov 128   ;;  %s2733_s29 = smov 8  }
  0x20   : > { %p1821_p5 = pneg %p2400_p4  ;;  %s2418_s22 = sadd.s32 1, %s2250_s21  }
  0x21   : > { %2759 = sst [smem:[#allocation23_spill]] %s2418_s22  ;;  %s256_s2 = ssub.s32 %s2250_s21, %s2418_s22 }
  0x22   : > { %p2408_p6 = pnand %p1821_p5, %p273_p1  ;;  %p257_p7 = scmp.eq.s32.totalorder %s256_s2, 0 }
  0x23   : > { %s548_s24 = sshll.u32 %s2756_s23, 4  ;;  %s259_s23 = sadd.s32 1, %s2246_s20  ;;  %s549_s24 = int_to_ptr.hbm [resolvable:$true] %s548_s24 }
  0x24   : > { %1827 = dma.hbm_to_vmem [thread:$0]  (!%p2408_p6), %s549_s24, 256, %s551_s26, [#allocation6], %s2732_s28, %s2732_s28, %s2733_s29  }
  0x25   : > { %p266_p8 = scmp.ne.s32.totalorder %s2246_s20, %s2242_s30  ;;  %p267_p9 = scmp.eq.s32.totalorder %s2250_s21, 0 }
  0x26   : > { %p272_p10 = scmp.ne.s32.totalorder %s2242_s30, %s2238_s0  ;;  %p1845_p13 = scmp.lt.s32.totalorder %s2250_s21, 2 }
  0x27   : > { %s2428_s3 = scalar_select %p257_p7, %s2246_s20, %s259_s23  }
  0x28   : > { %p268_p11 = por %p267_p9, %p266_p8  ;;  %p2432_p12 = por %p273_p1, %p272_p10 }
  0x29   : > { %2760 = sst [smem:[#allocation24_spill]] %s2428_s3  ;;  %s630_s24 = sand.u32 1, %s2250_s21  }
  0x2a   : > { %s2736_s26 = sand.u32 1, %s2246_s20   ;;  %s2762_s9 = sld [smem:[#allocation31_spill]] }
  0x2b   : > { %s633_s2 = scalar_lea.vmem [#allocation8], %s2736_s26  ;;  %p2445_p0 = pnand %p1845_p13, %p268_p11 }
  0x2c   : > { %s640_s17 = sshll.u32 %s633_s2, 4  ;;  %s2764_s14 = sld [smem:[#allocation25_spill]]  ;;  %s641_s17 = int_to_ptr.vmem [resolvable:$true] %s640_s17 }
  0x2d   : > { %s2452_s13 = scalar_lea.sflag [#allocation9], %s630_s24  ;;  %p1994_p5 = pneg %p2445_p0 }
  0x30   : > { %s636_s22 = scalar_lea.hbm %s2762_s9, %s2250_s21  ;;  %s1997_s3 = scalar_lea.hbm %s2762_s9, 2 }
  0x31   : > { %s638_s18 = sshll.u32 %s636_s22, 4  ;;  %s639_s18 = int_to_ptr.hbm [resolvable:$true] %s638_s18 }
  0x32   : > { %s534_s12 = sshll.u32 %s2764_s14, 4  ;;  %s1990_s28 = sshra.s32 %s639_s18, 4  ;;  %s535_s12 = int_to_ptr.hbm [resolvable:$true] %s534_s12  ;;  %s1991_s28 = int_to_ptr.hbm [resolvable:$true] %s1990_s28 }
  0x33   : > { %s1992_s29 = scalar_lea.hbm %s1991_s28, 1  ;;  %p1998_p9 = scmp.lt.s32.totalorder %s1991_s28, %s2762_s9 }
  0x34   : > { %p1993_p2 = scmp.ne.s32.totalorder %s1991_s28, %s1992_s29  ;;  %p1999_p10 = scmp.lt.s32.totalorder %s1997_s3, %s1992_s29 }
  0x36   : > { %p1995_p7 = pnand %p1994_p5, %p1993_p2  ;;  %p2000_p11 = por %p1999_p10, %p1998_p9 }
  0x38   : > { %p1996_p8 = pneg %p1995_p7 }
  0x3a   : > { %p2001_p13 = pnand %p2000_p11, %p1996_p8 }
  0x3c   : > { %2004 = shalt.err (!%p2001_p13)
}
  0x3d   : > { %1837 = dma.hbm_to_vmem [thread:$0]  (!%p2445_p0), %s639_s18, 16, %s641_s17, %s2452_s13  }
  0x3e   : > { %s2255_s14 = smov [#allocation2]   ;;  %s2765_s22 = sld [smem:[#allocation28_spill]] }
  0x3f   : > { %s536_s24 = sshll.u32 %s2255_s14, 4  ;;  %s2766_s26 = smov 8   ;;  %s537_s24 = int_to_ptr.vmem [resolvable:$true] %s536_s24 }
  0x40   : > { %s2767_s28 = smov 128   ;;  %s2768_s16 = sld [smem:[#allocation38_spill]] }
  0x41   : > { %1824 = dma.hbm_to_vmem [thread:$0]  (!%p2408_p6), %s535_s12, 256, %s537_s24, [#allocation3], %s2767_s28, %s2767_s28, %s2766_s26  }
  0x42   : > { %s2256_s18 = smov [#allocation7]   ;;  %s2257_s10 = smov [#allocation11]  }
  0x43   : > { %s568_s23 = sshll.u32 %s2256_s18, 4  ;;  %s579_s11 = sshll.u32 %s2257_s10, 4  ;;  %s569_s23 = int_to_ptr.vmem [resolvable:$true] %s568_s23  ;;  %s580_s11 = int_to_ptr.vmem [resolvable:$true] %s579_s11 }
  0x44   : > { %s566_s2 = sshll.u32 %s2765_s22, 4  ;;  %s2258_s14 = smov 64   ;;  %s567_s2 = int_to_ptr.hbm [resolvable:$true] %s566_s2 }
  0x45   : > { %1830 = dma.hbm_to_vmem [thread:$0]  (!%p2408_p6), %s567_s2, 16, %s569_s23, [#allocation6]  }
  0x46   : > { %s577_s17 = sshll.u32 %s2768_s16, 4  ;;  %s2259_s22 = smov 4   ;;  %s578_s17 = int_to_ptr.hbm [resolvable:$true] %s577_s17 }
  0x47   : > { %1833 = dma.hbm_to_vmem [thread:$0]  (!%p2408_p6), %s578_s17, 256, %s580_s11, [#allocation12], %s2258_s14, %s2258_s14, %s2259_s22  }
  0x48   : > { %s2769_s15 = sld [smem:[#allocation37_spill]]  ;;  %s2770_s26 = sand.u32 1, %s2246_s20  }
  0x49   : > { %s684_s28 = scalar_lea.vmem [#allocation10], %s2770_s26 }
  0x4a   : > { %s691_s29 = sshll.u32 %s684_s28, 4  ;;  %s692_s29 = int_to_ptr.vmem [resolvable:$true] %s691_s29 }
  0x4e   : > { %s687_s24 = scalar_lea.hbm %s2769_s15, %s2250_s21  ;;  %s2117_s23 = scalar_lea.hbm %s2769_s15, 2 }
  0x4f   : > { %s689_s3 = sshll.u32 %s687_s24, 4  ;;  %s690_s3 = int_to_ptr.hbm [resolvable:$true] %s689_s3 }
  0x50   : > { %s2110_s18 = sshra.s32 %s690_s3, 4  ;;  %s2111_s18 = int_to_ptr.hbm [resolvable:$true] %s2110_s18 }
  0x51   : > { %s2112_s2 = scalar_lea.hbm %s2111_s18, 1  ;;  %p2118_p6 = scmp.lt.s32.totalorder %s2111_s18, %s2769_s15 }
  0x52   : > { %p2113_p2 = scmp.ne.s32.totalorder %s2111_s18, %s2112_s2  ;;  %p2119_p9 = scmp.lt.s32.totalorder %s2117_s23, %s2112_s2 }
  0x54   : > { %p2115_p7 = pnand %p2113_p2, %p1994_p5  ;;  %p2120_p10 = por %p2119_p9, %p2118_p6 }
  0x56   : > { %p2116_p8 = pneg %p2115_p7 }
  0x58   : > { %p2121_p11 = pnand %p2120_p10, %p2116_p8 }
  0x5a   : > { %2124 = shalt.err (!%p2121_p11)
}
  0x5b   : > { %1840 = dma.hbm_to_vmem [thread:$0]  (!%p2445_p0), %s690_s3, 16, %s692_s29, %s2452_s13  }
  0x5c   : > { %700 = sbr.rel (%p2400_p4) target bundleno = 2542 (0x9ee), region = 92 }
  0x61   : > { %2213 = dma.done.wait (%p273_p1), [#allocation3], 256  }
  0x62   : > { %2215 = vsyncadd (%p273_p1), [#allocation3], 4294967040 }
  0x63   : > { %2217 = dma.done.wait (%p273_p1), [#allocation6], 272  }
  0x64   : > { %2219 = vsyncadd (%p273_p1), [#allocation6], 4294967024  ;;  %s717_s0 = sand.u32 1, %s2391_s1   ;;  %s719_s13 = sand.u32 1, %s2242_s30  }
  0x65   : > { %s718_s10 = scalar_lea.sflag [#allocation9], %s717_s0  ;;  %s2513_s25 = scalar_lea.vmem [#allocation8], %s719_s13 }
  0x66   : > { %2221 = dma.done.wait (%p2432_p12), %s718_s10, 32  }
  0x67   : > { %2223 = vsyncadd (%p2432_p12), %s718_s10, 4294967264  ;;  %s2519_s11 = scalar_lea.vmem [#allocation10], %s719_s13 }
  0x68   : > { %2225 = dma.done.wait (%p273_p1), [#allocation12], 256  }
  0x69   : > { %2227 = vsyncadd (%p273_p1), [#allocation12], 4294967040  ;;  %p826_p4 = scmp.lt.s32.totalorder %s2391_s1, 1  ;;  %s2771_s4 = sld [smem:[#allocation29_spill]] }
  0x6a   : > { %s2772_s6 = sld [smem:[#allocation30_spill]] }
  0x6b   : > { %s2527_s14 = scalar_select %p826_p4, %s2391_s1, 1 }
  0x6c   : > { %s2773_s22 = sld [smem:[#allocation32_spill]] }
  0x6d   : > { %s1777_s19 = sshll.u32 %s2527_s14, 4  ;;  %s2774_s24 = sld [smem:[#allocation33_spill]] }
  0x6e   : > { %s1780_s3 = sshll.u32 %s2527_s14, 5  ;;  %s2775_s15 = sld [smem:[#allocation35_spill]] }
  0x6f   : > { %s2537_s29 = scalar_lea.vmem %s2771_s4, %s1777_s19  ;;  %s2776_s23 = sld [smem:[#allocation34_spill]] }
  0x70   : > { %s2542_s2 = scalar_lea.vmem %s2772_s6, %s1777_s19  ;;  %s2777_s0 = sld [smem:[#allocation36_spill]] }
  0x72   : > { %s2555_s12 = scalar_lea.vmem %s2773_s22, %s1777_s19  ;;  %868 = sbr.rel (%p1694_p3) target bundleno = 397 (0x18d), region = 120 }
  0x73   : > { %s852_s4 = scalar_lea.vmem %s2774_s24, %s2527_s14  ;;  %s2778_s19 = sld [smem:[#allocation27_spill]] (!%p1694_p3) }
  0x74   : > { %s860_s16 = scalar_lea.vmem %s2775_s15, %s2527_s14 }
  0x75   : > { %s2569_s20 = scalar_lea.vmem %s2776_s23, %s1780_s3 }
  0x76   : > { %s863_s13 = scalar_lea.vmem %s2777_s0, %s2527_s14 }
  0x77   : > { %v869_v0 = vld [vmem:[#allocation2] sm:$0xff]  ;;  %vm873_vm0 = vcmask 261120   ;;  %v870_v2 = vld [vmem:[#allocation2 + $0x8] sm:$0xff]  ;;  %v2260_v4 = vmov 32.0  }
  0x78   : > { %v874_v1 = vsel %vm873_vm0, %v869_v0, 0.0  ;;  %v877_v3 = vsel %vm873_vm0, %v870_v2, 0.0  ;;  %1908 = vrcp.f32 %v2260_v4  ;;  %v1907_v38 = vld [vmem:[#allocation7] ss:$0 sm:$0xff] }
  0x79   : > { %875 = vadd.xlane.f32.xlu0 %v874_v1  ;;  %v1906_v35 = vld [vmem:[%s2778_s19] ss:$0 sm:$0xff] }
  0x7e   : > { %v1909_v5 = vpop.eup %1908 }
  0x7f   : > { %v881_v6 = vmul.f32 32.0, %v1909_v5  ;;  %vm885_vm1 = vweird.f32 %v1909_v5 }
  0x81   : > { %878 = vadd.xlane.f32.xlu0 %v877_v3  ;;  %v882_v7 = vsub.f32 1.0, %v881_v6 }
  0x83   : > { %v883_v8 = vmul.f32 %v1909_v5, %v882_v7 }
  0x85   : > { %v884_v9 = vadd.f32 %v1909_v5, %v883_v8 }
  0x87   : > { %v886_v10 = vsel %vm885_vm1, %v1909_v5, %v884_v9 }
  0xec   : > { %v876_v11 = vpop.xlane.xlu0 %875 }
  0xed   : > { %v887_v12 = vmul.f32 %v886_v10, %v876_v11 }
  0xef   : > { %v889_v13 = vsub.f32 %v869_v0, %v887_v12 }
  0xf1   : > { %v891_v14 = vmul.f32 %v889_v13, %v889_v13 }
  0xf3   : > { %v893_v15 = vsel %vm873_vm0, %v891_v14, 0.0 }
  0xf4   : > { %894 = vadd.xlane.f32.xlu1 %v893_v15  ;;  %v879_v16 = vpop.xlane.xlu0 %878 }
  0xf5   : > { %v888_v17 = vmul.f32 %v886_v10, %v879_v16 }
  0xf7   : > { %v890_v18 = vsub.f32 %v870_v2, %v888_v17 }
  0xf9   : > { %v892_v19 = vmul.f32 %v890_v18, %v890_v18 }
  0xfb   : > { %v896_v20 = vsel %vm873_vm0, %v892_v19, 0.0 }
  0xfc   : > { %897 = vadd.xlane.f32.xlu1 %v896_v20 }
 0x167   : > { %v895_v21 = vpop.xlane.xlu1 %894 }
 0x168   : > { %v899_v22 = vmul.f32 %v895_v21, %v886_v10 }
 0x16a   : > { %v901_v23 = vadd.f32 1e-12, %v899_v22 }
 0x16c   : > { %1910 = vrsqrt.f32 %v901_v23  ;;  %vm909_vm3 = vweird.f32 %v901_v23 }
 0x16f   : > { %v898_v24 = vpop.xlane.xlu1 %897 }
 0x170   : > { %v900_v25 = vmul.f32 %v898_v24, %v886_v10 }
 0x172   : > { %v1911_v26 = vpop.eup %1910  ;;  %v902_v27 = vadd.f32 1e-12, %v900_v25 }
 0x173   : > { %v904_v28 = vmul.f32 %v1911_v26, %v901_v23  ;;  %vm910_vm2 = vweird.f32 %v1911_v26 }
 0x174   : > { %1912 = vrsqrt.f32 %v902_v27  ;;  %vm911_vm4 = vmor %vm909_vm3, %vm910_vm2  ;;  %vm919_vm6 = vweird.f32 %v902_v27 }
 0x175   : > { %v905_v29 = vmul.f32 %v1911_v26, %v904_v28 }
 0x177   : > { %v906_v30 = vmul.f32 0.5, %v905_v29 }
 0x179   : > { %v907_v31 = vsub.f32 1.5, %v906_v30 }
 0x17a   : > { %v1913_v32 = vpop.eup %1912 }
 0x17b   : > { %v908_v33 = vmul.f32 %v1911_v26, %v907_v31  ;;  %v914_v34 = vmul.f32 %v1913_v32, %v902_v27  ;;  %vm920_vm5 = vweird.f32 %v1913_v32 }
 0x17c   : > { %vm921_vm7 = vmor %vm919_vm6, %vm920_vm5 }
 0x17d   : > { %v912_v36 = vsel %vm911_vm4, %v1911_v26, %v908_v33  ;;  %v915_v37 = vmul.f32 %v1913_v32, %v914_v34 }
 0x17e   : > { %v923_v39 = vmul.f32 %v912_v36, %v889_v13 }
 0x17f   : > { %v916_v40 = vmul.f32 0.5, %v915_v37 }
 0x180   : > { %v928_v41 = vmul.f32 %v1906_v35, %v923_v39 }
 0x181   : > { %v917_v42 = vsub.f32 1.5, %v916_v40 }
 0x182   : > { %v933_v43 = vadd.f32 %v1907_v38, %v928_v41 }
 0x183   : > { %v918_v44 = vmul.f32 %v1913_v32, %v917_v42 }
 0x184   : > { %935 = vst.msk [vmem:[#allocation13] sm:$0xff] %vm873_vm0, %v933_v43 }
 0x185   : > { %v922_v45 = vsel %vm921_vm7, %v1913_v32, %v918_v44 }
 0x186   : > { %v924_v46 = vmul.f32 %v922_v45, %v890_v18 }
 0x188   : > { %v929_v47 = vmul.f32 %v1906_v35, %v924_v46 }
 0x18a   : > { %v934_v48 = vadd.f32 %v1907_v38, %v929_v47 }
 0x18c   : > { %936 = vst.msk [vmem:[#allocation13 + $0x8] sm:$0xff] %vm873_vm0, %v934_v48 }
 0x18d PF: > { %v1782_v49 = vld [vmem:[%s2537_s29 + $0x8] sm:$0xff]  ;;  %v1781_v50 = vld [vmem:[%s2537_s29] sm:$0xff]  ;;  %v2588_v51 = vld [vmem:[#allocation13] sm:$0xff]  ;;  %vm962_vm8 = vcmask 261120   ;;  %s2779_s0 = scalar_lea.vmem %s2717_s5, %s2527_s14  ;;  %s2261_s29 = smov 112   ;;  %vm984_vm9 = vcmask 130048  }
 0x18e   : > { %972 = vmatpush.bf16.msra.mxu0 %v1782_v49  ;;  %v1919_v55 = vld [vmem:[%s2779_s0] ss:$0 sm:$0xff]  ;;  %s2262_s10 = smov 96   ;;  %s2263_s22 = smov 80   ;;  %v940_v2 = vld [vmem:[#allocation5] sm:$0xff]  ;;  %v941_v12 = vld [vmem:[#allocation5 + $0x8] sm:$0xff] }
 0x18f   : > { %s2264_s26 = smov 48   ;;  %s2265_s28 = smov 64   ;;  %vm1329_vm1 = vcmask 523264  }
 0x190   : > { %s2266_s3 = smov 16   ;;  %s2780_s27 = scalar_lea.vmem %s2719_s7, %s2527_s14 }
 0x191   : > { %s2781_s9 = scalar_lea.vmem %s2720_s8, %s2527_s14  ;;  %p1761_p1 = scmp.ne.s32.totalorder %s2391_s1, 1 }
 0x192   : > { %973 = vmatpush.bf16.msra.mxu0 %v1781_v50 }
 0x193   : > { %v2590_v52 = vld [vmem:[#allocation13 + $0x8] sm:$0xff] }
 0x194   : > { %v939_v53 = vpack.c.bf16 %v2590_v52, %v2588_v51 }
 0x196   : > { %1721 = vmatmul.msk.bf16.vlgmr.msra.gmra.mxu0 %vm962_vm8, %v939_v53 }
 0x213   : > { %v975_v54 = vpop.f32.mrf.mxu0 }
 0x214   : > { %v976_v57 = vadd.f32 %v1919_v55, %v975_v54 }
 0x21b   : > { %v977_v56 = vpop.f32.mrf.mxu0 }
 0x21c   : > { %v978_v58 = vadd.f32 %v1919_v55, %v977_v56 }
 0x21e   : > { %v980_v59 = vpack.c.bf16 %v978_v58, %v976_v57  ;;  %v1784_v57 = vld [vmem:[%s2542_s2 + $0x8] sm:$0xff]  ;;  %v1783_v58 = vld [vmem:[%s2542_s2] sm:$0xff] }
 0x21f   : > { %1163 = vmatpush.bf16.msrb.mxu0 %v1784_v57 }
 0x220   : > { %1052 = vrot.lane.b32.xlu1 %v980_v59, %s2261_s29  ;;  %982 = vrot.lane.b32.xlu0 %v980_v59, %s2262_s10 }
 0x223   : > { %1164 = vmatpush.bf16.msrb.mxu0 %v1783_v58  ;;  %v1922_v58 = vld [vmem:[%s2513_s25] ss:$0 sm:$0xff] }
 0x228   : > { %1054 = vrot.lane.b32.xlu0 %v980_v59, %s2263_s22 }
 0x292   : > { %v983_v60 = vpop.permute.xlu0 %982  ;;  %v1053_v0 = vpop.permute.xlu1 %1052 }
 0x293   : > { %v989_v61 = vsel %vm984_vm9, %v983_v60, 0 }
 0x294   : > { %998 = vmatpush.bf16.xpose.msra.mxu1 %v989_v61 }
 0x29a   : > { %v1055_v62 = vpop.permute.xlu0 %1054 }
 0x29b   : > { %1722 = vmatmul.msk.bf16.vlgmr.msra.gmra.mxu1 %vm984_vm9, %v980_v59  ;;  %v1060_v63 = vsel %vm984_vm9, %v1055_v62, 0 }
 0x29c   : > { %1069 = vmatpush.bf16.xpose.msra.mxu3 %v1060_v63 }
 0x2a3   : > { %1724 = vmatmul.msk.bf16.vlgmr.msra.gmra.mxu3 %vm984_vm9, %v1053_v0 }
 0x318   : > { %v1000_v1 = vpop.f32.mrf.mxu1 }
 0x319   : > { %v1005_v3 = vmul.f32 0.25, %v1000_v1 }
 0x31b   : > { %v1007_v4 = vadd.f32 %v1005_v3, %v940_v2 }
 0x31d   : > { %v1009_v5 = vsel %vm984_vm9, %v1007_v4, -inf }
 0x31e   : > { %1010 = vmax.xlane.f32.xlu1 %v1009_v5 }
 0x320   : > { %v1002_v8 = vpop.f32.mrf.mxu1 }
 0x321   : > { %v1006_v10 = vmul.f32 0.25, %v1002_v8 }
 0x323   : > { %v1008_v15 = vadd.f32 %v1006_v10, %v941_v12 }
 0x325   : > { %v1012_v17 = vsel %vm984_vm9, %v1008_v15, -inf }
 0x326   : > { %v1071_v6 = vpop.f32.mrf.mxu3 }
 0x327   : > { %v1076_v7 = vmul.f32 0.25, %v1071_v6  ;;  %v1920_v6 = vld [vmem:[%s2780_s27] ss:$0 sm:$0xff] }
 0x329   : > { %v1078_v9 = vadd.f32 %v1076_v7, %v940_v2 }
 0x32b   : > { %v1080_v11 = vsel %vm984_vm9, %v1078_v9, -inf }
 0x32c   : > { %1081 = vmax.xlane.f32.xlu2 %v1080_v11 }
 0x32e   : > { %v1073_v13 = vpop.f32.mrf.mxu3 }
 0x32f   : > { %v1077_v14 = vmul.f32 0.25, %v1073_v13 }
 0x331   : > { %v1079_v16 = vadd.f32 %v1077_v14, %v941_v12 }
 0x333   : > { %v1083_v18 = vsel %vm984_vm9, %v1079_v16, -inf }
 0x334   : > { %1013 = vmax.xlane.f32.xlu2 %v1012_v17  ;;  %1084 = vmax.xlane.f32.xlu0 %v1083_v18 }
 0x348   : > { %1103 = vrot.lane.b32.xlu0 %v980_v59, %s2264_s26 }
 0x391   : > { %v1011_v19 = vpop.xlane.xlu1 %1010 }
 0x392   : > { %v1015_v20 = vsub.f32 %v1007_v4, %v1011_v19 }
 0x394   : > { %v1017_v21 = vmul.f32 1.442695, %v1015_v20 }
 0x396   : > { %1927 = vpow2.f32 %v1017_v21 }
 0x39c   : > { %v1928_v22 = vpop.eup %1927 }
 0x39d   : > { %v1021_v23 = vsel %vm984_vm9, %v1928_v22, 0.0 }
 0x39e   : > { %1022 = vadd.xlane.f32.xlu2 %v1021_v23 }
 0x39f   : > { %v1082_v24 = vpop.xlane.xlu2 %1081 }
 0x3a0   : > { %v1086_v25 = vsub.f32 %v1078_v9, %v1082_v24 }
 0x3a2   : > { %v1088_v26 = vmul.f32 1.442695, %v1086_v25 }
 0x3a4   : > { %1929 = vpow2.f32 %v1088_v26 }
 0x3a7   : > { %v1014_v27 = vpop.xlane.xlu2 %1013  ;;  %v1085_v34 = vpop.xlane.xlu0 %1084 }
 0x3a8   : > { %v1016_v28 = vsub.f32 %v1008_v15, %v1014_v27  ;;  %v1087_v35 = vsub.f32 %v1079_v16, %v1085_v34  ;;  %v2267_v15 = vmov 32.0  }
 0x3aa   : > { %v1930_v29 = vpop.eup %1929  ;;  %v1019_v30 = vmul.f32 1.442695, %v1016_v28  ;;  %v1090_v36 = vmul.f32 1.442695, %v1087_v35 }
 0x3ab   : > { %v1092_v31 = vsel %vm984_vm9, %v1930_v29, 0.0 }
 0x3ac   : > { %1931 = vpow2.f32 %v1019_v30  ;;  %1093 = vadd.xlane.f32.xlu1 %v1092_v31  ;;  %v1786_v30 = vld [vmem:[%s2555_s12 + $0x8] sm:$0xff] }
 0x3ad   : > { %1933 = vpow2.f32 %v1090_v36  ;;  %1266 = vmatpush.bf16.msrb.mxu1 %v1786_v30 }
 0x3b2   : > { %v1932_v32 = vpop.eup %1931 }
 0x3b3   : > { %v1024_v33 = vsel %vm984_vm9, %v1932_v32, 0.0  ;;  %v1934_v37 = vpop.eup %1933 }
 0x3b4   : > { %1025 = vadd.xlane.f32.xlu2 %v1024_v33  ;;  %v1095_v38 = vsel %vm984_vm9, %v1934_v37, 0.0  ;;  %v1785_v33 = vld [vmem:[%s2555_s12] sm:$0xff] }
 0x3b5   : > { %1267 = vmatpush.bf16.msrb.mxu1 %v1785_v33 }
 0x3ba   : > { %v1104_v46 = vpop.permute.xlu0 %1103 }
 0x3cc   : > { %1032 = vrot.lane.b32.xlu2 %v980_v59, %s2265_s28 }
 0x3f5   : > { %1096 = vadd.xlane.f32.xlu2 %v1095_v38 }
 0x411   : > { %v1023_v39 = vpop.xlane.xlu2 %1022 }
 0x412   : > { %1935 = vrcp.f32 %v1023_v39 }
 0x418   : > { %v1936_v41 = vpop.eup %1935 }
 0x419   : > { %v1029_v44 = vmul.f32 %v1936_v41, %v1928_v22 }
 0x41f   : > { %v1094_v48 = vpop.xlane.xlu1 %1093 }
 0x427   : > { %v1026_v40 = vpop.xlane.xlu2 %1025 }
 0x428   : > { %1937 = vrcp.f32 %v1026_v40 }
 0x429   : > { %1939 = vrcp.f32 %v1094_v48 }
 0x42e   : > { %v1938_v42 = vpop.eup %1937 }
 0x42f   : > { %v1033_v43 = vpop.permute.xlu2 %1032  ;;  %v1030_v45 = vmul.f32 %v1938_v42, %v1932_v32  ;;  %v1940_v50 = vpop.eup %1939 }
 0x430   : > { %1045 = vmatpush.bf16.msra.mxu2 %v1033_v43  ;;  %v1100_v54 = vmul.f32 %v1940_v50, %v1930_v29 }
 0x431   : > { %v1031_v47 = vpack.c.bf16 %v1030_v45, %v1029_v44 }
 0x433   : > { %1723 = vmatmul.msk.bf16.vlgmr.msra.gmra.mxu2 %vm984_vm9, %v1031_v47 }
 0x434   : > { %1116 = vmatpush.bf16.msrb.mxu2 %v1104_v46 }
 0x468   : > { %v1097_v49 = vpop.xlane.xlu2 %1096 }
 0x469   : > { %1941 = vrcp.f32 %v1097_v49 }
 0x46a   : > { %1943 = vrcp.f32 %v2267_v15 }
 0x46f   : > { %v1942_v53 = vpop.eup %1941 }
 0x470   : > { %v1101_v55 = vmul.f32 %v1942_v53, %v1934_v37  ;;  %v1944_v16 = vpop.eup %1943  ;;  %v1921_v53 = vld [vmem:[%s2781_s9] ss:$0 sm:$0xff] }
 0x471   : > { %v1182_v17 = vmul.f32 32.0, %v1944_v16  ;;  %vm1186_vm10 = vweird.f32 %v1944_v16 }
 0x472   : > { %v1102_v56 = vpack.c.bf16 %v1101_v55, %v1100_v54 }
 0x473   : > { %v1183_v18 = vsub.f32 1.0, %v1182_v17 }
 0x474   : > { %1725 = vmatmul.msk.bf16.vlgmr.msrb.gmra.mxu2 %vm984_vm9, %v1102_v56 }
 0x475   : > { %v1184_v19 = vmul.f32 %v1944_v16, %v1183_v18 }
 0x477   : > { %v1185_v20 = vadd.f32 %v1944_v16, %v1184_v19 }
 0x4b6   : > { %v1047_v59 = vpop.f32.mrf.mxu2 }
 0x4be   : > { %v1049_v60 = vpop.f32.mrf.mxu2 }
 0x4f7   : > { %v1118_v61 = vpop.f32.mrf.mxu2 }
 0x4ff   : > { %v1120_v62 = vpop.f32.mrf.mxu2 }
 0x500   : > { %v1914_v63 = vpack.i.bf16 %v1120_v62, %v1118_v61 }
 0x502   : > { %1915 = vrot.lane.b32.xlu1 %v1914_v63, %s2266_s3  ;;  %v1790_v63 = vld [vmem:[%s2569_s20 + $0x18] sm:$0xff] }
 0x503   : > { %1337 = vmatpush.bf16.msrb.mxu3 %v1790_v63  ;;  %v1926_v63 = vld [vmem:[%s2519_s11] ss:$0 sm:$0xff] }
 0x574   : > { %v1916_v0 = vpop.permute.xlu1 %1915 }
 0x575   : > { %v1918_v1 = vunpack.i.h.bf16 %v1916_v0  ;;  %v1917_v2 = vunpack.i.l.bf16 %v1916_v0  ;;  %v1789_v0 = vld [vmem:[%s2569_s20 + $0x10] sm:$0xff] }
 0x576   : > { %1338 = vmatpush.bf16.msrb.mxu3 %v1789_v0 }
 0x577   : > { %v1132_v3 = vsel %vm984_vm9, %v1049_v60, %v1918_v1  ;;  %v1131_v4 = vsel %vm984_vm9, %v1047_v59, %v1917_v2  ;;  %v1788_v1 = vld [vmem:[%s2569_s20 + $0x8] sm:$0xff]  ;;  %v1787_v2 = vld [vmem:[%s2569_s20] sm:$0xff] }
 0x578   : > { %v1133_v5 = vpack.c.bf16 %v1132_v3, %v1131_v4  ;;  %v1923_v3 = vld [vmem:[%s852_s4] ss:$0 sm:$0xff] }
 0x57a   : > { %1734 = vmatmul.msk.bf16.vlgmr.msrb.gmra.mxu0 %vm962_vm8, %v1133_v5  ;;  %1339 = vmatpush.bf16.msrb.mxu3 %v1788_v1 }
 0x57e   : > { %1340 = vmatpush.bf16.msrb.mxu3 %v1787_v2 }
 0x5f7   : > { %v1166_v7 = vpop.f32.mrf.mxu0 }
 0x5f8   : > { %v1167_v8 = vadd.f32 %v1920_v6, %v1166_v7 }
 0x5fa   : > { %v1171_v9 = vadd.f32 %v1167_v8, %v2588_v51  ;;  %v2628_v51 = vsel %vm1186_vm10, %v1944_v16, %v1185_v20 }
 0x5fc   : > { %v1175_v10 = vsel %vm962_vm8, %v1171_v9, 0.0 }
 0x5fd   : > { %1176 = vadd.xlane.f32.xlu0 %v1175_v10 }
 0x5ff   : > { %v1168_v11 = vpop.f32.mrf.mxu0 }
 0x600   : > { %v1169_v12 = vadd.f32 %v1920_v6, %v1168_v11 }
 0x602   : > { %v1172_v13 = vadd.f32 %v1169_v12, %v2590_v52 }
 0x604   : > { %v1178_v14 = vsel %vm962_vm8, %v1172_v13, 0.0 }
 0x605   : > { %1179 = vadd.xlane.f32.xlu1 %v1178_v14 }
 0x670   : > { %v1177_v21 = vpop.xlane.xlu0 %1176 }
 0x671   : > { %v1188_v22 = vmul.f32 %v2628_v51, %v1177_v21 }
 0x673   : > { %v1190_v23 = vsub.f32 %v1171_v9, %v1188_v22 }
 0x675   : > { %v1192_v52 = vmul.f32 %v1190_v23, %v1190_v23 }
 0x677   : > { %v1194_v24 = vsel %vm962_vm8, %v1192_v52, 0.0 }
 0x678   : > { %v1180_v25 = vpop.xlane.xlu1 %1179  ;;  %1195 = vadd.xlane.f32.xlu2 %v1194_v24 }
 0x679   : > { %v1189_v26 = vmul.f32 %v2628_v51, %v1180_v25 }
 0x67b   : > { %v1191_v27 = vsub.f32 %v1172_v13, %v1189_v26  ;;  %v1924_v26 = vld [vmem:[%s860_s16] ss:$0 sm:$0xff] }
 0x67d   : > { %v1193_v28 = vmul.f32 %v1191_v27, %v1191_v27 }
 0x67f   : > { %v1197_v29 = vsel %vm962_vm8, %v1193_v28, 0.0 }
 0x680   : > { %1198 = vadd.xlane.f32.xlu2 %v1197_v29 }
 0x6eb   : > { %v1196_v31 = vpop.xlane.xlu2 %1195 }
 0x6ec   : > { %v1200_v32 = vmul.f32 %v1196_v31, %v2628_v51 }
 0x6ee   : > { %v1202_v34 = vadd.f32 1e-12, %v1200_v32 }
 0x6f0   : > { %1945 = vrsqrt.f32 %v1202_v34  ;;  %vm1210_vm12 = vweird.f32 %v1202_v34 }
 0x6f3   : > { %v1199_v35 = vpop.xlane.xlu2 %1198 }
 0x6f4   : > { %v1201_v36 = vmul.f32 %v1199_v35, %v2628_v51 }
 0x6f6   : > { %v1946_v37 = vpop.eup %1945  ;;  %v1203_v38 = vadd.f32 1e-12, %v1201_v36 }
 0x6f7   : > { %v1205_v39 = vmul.f32 %v1946_v37, %v1202_v34  ;;  %vm1211_vm11 = vweird.f32 %v1946_v37 }
 0x6f8   : > { %1947 = vrsqrt.f32 %v1203_v38  ;;  %vm1212_vm13 = vmor %vm1210_vm12, %vm1211_vm11  ;;  %vm1220_vm15 = vweird.f32 %v1203_v38 }
 0x6f9   : > { %v1206_v40 = vmul.f32 %v1946_v37, %v1205_v39 }
 0x6fb   : > { %v1207_v41 = vmul.f32 0.5, %v1206_v40 }
 0x6fd   : > { %v1208_v42 = vsub.f32 1.5, %v1207_v41 }
 0x6fe   : > { %v1948_v43 = vpop.eup %1947 }
 0x6ff   : > { %v1209_v44 = vmul.f32 %v1946_v37, %v1208_v42  ;;  %v1215_v45 = vmul.f32 %v1948_v43, %v1203_v38  ;;  %vm1221_vm14 = vweird.f32 %v1948_v43 }
 0x700   : > { %vm1222_vm0 = vmor %vm1220_vm15, %vm1221_vm14 }
 0x701   : > { %v1216_v46 = vmul.f32 %v1948_v43, %v1215_v45  ;;  %v1213_v47 = vsel %vm1212_vm13, %v1946_v37, %v1209_v44 }
 0x702   : > { %v1224_v50 = vmul.f32 %v1213_v47, %v1190_v23 }
 0x703   : > { %v1217_v48 = vmul.f32 0.5, %v1216_v46 }
 0x704   : > { %v1229_v57 = vmul.f32 %v1921_v53, %v1224_v50 }
 0x705   : > { %v1218_v49 = vsub.f32 1.5, %v1217_v48 }
 0x706   : > { %v1234_v60 = vadd.f32 %v1922_v58, %v1229_v57 }
 0x707   : > { %v1219_v54 = vmul.f32 %v1948_v43, %v1218_v49 }
 0x709   : > { %v1223_v55 = vsel %vm1222_vm0, %v1948_v43, %v1219_v54 }
 0x70a   : > { %v1225_v56 = vmul.f32 %v1223_v55, %v1191_v27 }
 0x70c   : > { %v1230_v59 = vmul.f32 %v1921_v53, %v1225_v56 }
 0x70e   : > { %v1235_v61 = vadd.f32 %v1922_v58, %v1230_v59 }
 0x710   : > { %v1236_v62 = vpack.c.bf16 %v1235_v61, %v1234_v60 }
 0x712   : > { %1743 = vmatmul.msk.bf16.vlgmr.msrb.gmra.mxu1 %vm962_vm8, %v1236_v62 }
 0x78f   : > { %v1269_v4 = vpop.f32.mrf.mxu1 }
 0x790   : > { %v1270_v5 = vadd.f32 %v1923_v3, %v1269_v4 }
 0x792   : > { %v1276_v6 = vmul.f32 0.044715, %v1270_v5  ;;  %v1274_v21 = vmul.f32 0.5, %v1270_v5 }
 0x794   : > { %v1278_v7 = vmul.f32 %v1276_v6, %v1270_v5 }
 0x796   : > { %v1280_v8 = vmul.f32 %v1278_v7, %v1270_v5 }
 0x797   : > { %v1271_v9 = vpop.f32.mrf.mxu1 }
 0x798   : > { %v1282_v10 = vadd.f32 %v1280_v8, %v1270_v5  ;;  %v1272_v11 = vadd.f32 %v1923_v3, %v1271_v9 }
 0x79a   : > { %v1277_v12 = vmul.f32 0.044715, %v1272_v11  ;;  %v1284_v13 = vmul.f32 0.7978846, %v1282_v10  ;;  %v1275_v22 = vmul.f32 0.5, %v1272_v11 }
 0x79c   : > { %v1279_v14 = vmul.f32 %v1277_v12, %v1272_v11  ;;  %1949 = vtanh.f32 %v1284_v13 }
 0x79e   : > { %v1281_v15 = vmul.f32 %v1279_v14, %v1272_v11 }
 0x7a0   : > { %v1283_v16 = vadd.f32 %v1281_v15, %v1272_v11 }
 0x7a2   : > { %v1285_v17 = vmul.f32 0.7978846, %v1283_v16  ;;  %v1950_v18 = vpop.eup %1949 }
 0x7a3   : > { %v1288_v19 = vadd.f32 1.0, %v1950_v18 }
 0x7a4   : > { %1951 = vtanh.f32 %v1285_v17 }
 0x7a5   : > { %v1290_v52 = vmul.f32 %v1288_v19, %v1274_v21 }
 0x7aa   : > { %v1952_v20 = vpop.eup %1951 }
 0x7ab   : > { %v1289_v23 = vadd.f32 1.0, %v1952_v20 }
 0x7ad   : > { %v1291_v24 = vmul.f32 %v1289_v23, %v1275_v22 }
 0x7af   : > { %v1292_v25 = vpack.c.bf16 %v1291_v24, %v1290_v52 }
 0x7b1   : > { %1760 = vmatmul.msk.bf16.vlgmr.msrb.gmra.mxu3 %vm1329_vm1, %v1292_v25 }
 0x834   : > { %v1342_v27 = vpop.f32.mrf.mxu3 }
 0x835   : > { %v1343_v28 = vadd.f32 %v1924_v26, %v1342_v27 }
 0x837   : > { %v1347_v29 = vadd.f32 %v1343_v28, %v1234_v60 }
 0x839   : > { %v1351_v30 = vsel %vm962_vm8, %v1347_v29, 0.0 }
 0x83a   : > { %1352 = vadd.xlane.f32.xlu2 %v1351_v30 }
 0x83c   : > { %v1344_v31 = vpop.f32.mrf.mxu3 }
 0x83d   : > { %v1345_v32 = vadd.f32 %v1924_v26, %v1344_v31 }
 0x83f   : > { %v1348_v33 = vadd.f32 %v1345_v32, %v1235_v61  ;;  %v1925_v61 = vld [vmem:[%s863_s13] ss:$0 sm:$0xff]  ;;  %s2785_s13 = sld [smem:[#allocation39_spill]] (!%p1761_p1) }
 0x841   : > { %v1354_v34 = vsel %vm962_vm8, %v1348_v33, 0.0 }
 0x842   : > { %1355 = vadd.xlane.f32.xlu0 %v1354_v34 }
 0x8ad   : > { %v1353_v35 = vpop.xlane.xlu2 %1352 }
 0x8ae   : > { %v1357_v36 = vmul.f32 %v1353_v35, %v2628_v51 }
 0x8b0   : > { %v1359_v37 = vsub.f32 %v1347_v29, %v1357_v36 }
 0x8b2   : > { %v1361_v38 = vmul.f32 %v1359_v37, %v1359_v37 }
 0x8b4   : > { %v1363_v39 = vsel %vm962_vm8, %v1361_v38, 0.0 }
 0x8b5   : > { %v1356_v40 = vpop.xlane.xlu0 %1355  ;;  %1364 = vadd.xlane.f32.xlu2 %v1363_v39 }
 0x8b6   : > { %v1358_v41 = vmul.f32 %v1356_v40, %v2628_v51 }
 0x8b8   : > { %v1360_v42 = vsub.f32 %v1348_v33, %v1358_v41 }
 0x8ba   : > { %v1362_v43 = vmul.f32 %v1360_v42, %v1360_v42 }
 0x8bc   : > { %v1366_v44 = vsel %vm962_vm8, %v1362_v43, 0.0 }
 0x8bd   : > { %1367 = vadd.xlane.f32.xlu1 %v1366_v44 }
 0x928   : > { %v1365_v45 = vpop.xlane.xlu2 %1364 }
 0x929   : > { %v1369_v46 = vmul.f32 %v1365_v45, %v2628_v51 }
 0x92b   : > { %v1371_v47 = vadd.f32 1e-12, %v1369_v46 }
 0x92d   : > { %1953 = vrsqrt.f32 %v1371_v47  ;;  %vm1379_vm3 = vweird.f32 %v1371_v47 }
 0x930   : > { %v1368_v48 = vpop.xlane.xlu1 %1367 }
 0x931   : > { %v1370_v49 = vmul.f32 %v1368_v48, %v2628_v51 }
 0x933   : > { %v1954_v50 = vpop.eup %1953  ;;  %v1372_v53 = vadd.f32 1e-12, %v1370_v49 }
 0x934   : > { %v1374_v54 = vmul.f32 %v1954_v50, %v1371_v47  ;;  %vm1380_vm2 = vweird.f32 %v1954_v50 }
 0x935   : > { %1955 = vrsqrt.f32 %v1372_v53  ;;  %vm1381_vm4 = vmor %vm1379_vm3, %vm1380_vm2  ;;  %vm1389_vm6 = vweird.f32 %v1372_v53 }
 0x936   : > { %v1375_v55 = vmul.f32 %v1954_v50, %v1374_v54 }
 0x938   : > { %v1376_v56 = vmul.f32 0.5, %v1375_v55 }
 0x93a   : > { %v1377_v57 = vsub.f32 1.5, %v1376_v56 }
 0x93b   : > { %v1956_v58 = vpop.eup %1955 }
 0x93c   : > { %v1378_v59 = vmul.f32 %v1954_v50, %v1377_v57  ;;  %v1384_v60 = vmul.f32 %v1956_v58, %v1372_v53  ;;  %vm1390_vm5 = vweird.f32 %v1956_v58 }
 0x93d   : > { %vm1391_vm7 = vmor %vm1389_vm6, %vm1390_vm5 }
 0x93e   : > { %v1382_v51 = vsel %vm1381_vm4, %v1954_v50, %v1378_v59  ;;  %v1385_v62 = vmul.f32 %v1956_v58, %v1384_v60 }
 0x93f   : > { %v1393_v0 = vmul.f32 %v1382_v51, %v1359_v37 }
 0x940   : > { %v1386_v1 = vmul.f32 0.5, %v1385_v62 }
 0x941   : > { %v1398_v2 = vmul.f32 %v1925_v61, %v1393_v0 }
 0x942   : > { %v1387_v3 = vsub.f32 1.5, %v1386_v1 }
 0x943   : > { %v1403_v4 = vadd.f32 %v1926_v63, %v1398_v2 }
 0x944   : > { %v1388_v5 = vmul.f32 %v1956_v58, %v1387_v3 }
 0x945   : > { %1405 = vst.msk [vmem:[#allocation13] sm:$0xff] %vm962_vm8, %v1403_v4 }
 0x946   : > { %v1392_v6 = vsel %vm1391_vm7, %v1956_v58, %v1388_v5 }
 0x947   : > { %v1394_v7 = vmul.f32 %v1392_v6, %v1360_v42 }
 0x949   : > { %v1399_v8 = vmul.f32 %v1925_v61, %v1394_v7  ;;  %1410 = sbr.rel (%p1761_p1) target bundleno = 2527 (0x9df), region = 124 }
 0x94b   : > { %v1404_v9 = vadd.f32 %v1926_v63, %v1399_v8 }
 0x94d   : > { %1406 = vst.msk [vmem:[#allocation13 + $0x8] sm:$0xff] %vm962_vm8, %v1404_v9 }
 0x94e   : > { %v1792_v10 = vld [vmem:[#allocation11 + $0x8] sm:$0xff]  ;;  %v1791_v11 = vld [vmem:[#allocation11] sm:$0xff]  ;;  %v1957_v14 = vld [vmem:[%s2785_s13] ss:$0 sm:$0xff]  ;;  %vm1450_vm9 = vcmask 254976  }
 0x94f   : > { %1442 = vmatpush.bf16.msra.mxu0 %v1792_v10 }
 0x953   : > { %1443 = vmatpush.bf16.msra.mxu0 %v1791_v11 }
 0x954   : > { %v1411_v12 = vld [vmem:[#allocation13] ss:$8 sm:$0x3] }
 0x955   : > { %v1412_v13 = vpack.c.bf16 %v1411_v12, %v1411_v12 }
 0x957   : > { %1770 = vmatmul.msk.bf16.vlgmr.msra.gmra.mxu0 %vm962_vm8, %v1412_v13 }
 0x9d4   : > { %v1445_v15 = vpop.f32.mrf.mxu0 }
 0x9d5   : > { %v1446_v16 = vadd.f32 %v1957_v14, %v1445_v15 }
 0x9d7   : > { %1958 = vtanh.f32 %v1446_v16 }
 0x9dc   : > { %v1447_v17 = vpop.f32.mrf.mxu0 }
 0x9dd   : > { %v1959_v18 = vpop.eup %1958 }
 0x9de   : > { %1451 = vst.msk [vmem:[#allocation14] sm:$0x3] %vm1450_vm9, %v1959_v18 }
 0x9df PF: > { %p1850_p3 = scmp.eq.s32.totalorder %s2391_s1, 1  ;;  %s2268_s23 = smov [#allocation13]  }
 0x9e0   : > { %s1457_s0 = sshll.u32 %s2268_s23, 4  ;;  %s2786_s22 = sld [smem:[#allocation40_spill]]  ;;  %s1458_s0 = int_to_ptr.vmem [resolvable:$true] %s1457_s0 }
 0x9e1   : > { %s2269_s28 = smov 128   ;;  %s2270_s3 = smov 8  }
 0x9e2   : > { %s2787_s27 = sld [smem:[#allocation41_spill]]  ;;  %s2271_s17 = smov [#allocation14]  }
 0x9e3   : > { %s1472_s9 = sshll.u32 %s2271_s17, 4  ;;  %s1473_s9 = int_to_ptr.vmem [resolvable:$true] %s1472_s9 }
 0x9e6   : > { %s1459_s26 = sshll.u32 %s2786_s22, 4  ;;  %s1460_s26 = int_to_ptr.hbm [resolvable:$true] %s1459_s26 }
 0x9e7   : > { %1814 = dma.vmem_to_hbm [thread:$0]  (%p1850_p3), %s1458_s0, 256, %s1460_s26, [#allocation4], %s2269_s28, %s2269_s28, %s2270_s3  }
 0x9e8   : > { %s1474_s12 = sshll.u32 %s2787_s27, 4  ;;  %s1475_s12 = int_to_ptr.hbm [resolvable:$true] %s1474_s12 }
 0x9e9   : > { %1816 = dma.vmem_to_hbm [thread:$0]  (%p1850_p3), %s1473_s9, 32, %s1475_s12, [#allocation15]  }
 0x9ea   : > { %2229 = dma.done.wait (%p1850_p3), [#allocation4], 256  }
 0x9eb   : > { %2231 = vsyncadd (%p1850_p3), [#allocation4], 4294967040 }
 0x9ec   : > { %2233 = dma.done.wait (%p1850_p3), [#allocation15], 32  }
 0x9ed   : > { %2235 = vsyncadd (%p1850_p3), [#allocation15], 4294967264 }
 0x9ee PF: > { %s2788_s21 = sld [smem:[#allocation23_spill]]  ;;  %s2791_s0 = smov %s2242_s30 }
 0x9ef   : > { %s2789_s6 = sld [smem:[#allocation22_spill]] }
 0x9f0   : > { %s2790_s20 = sld [smem:[#allocation24_spill]] }
 0x9f4   : > { %p35_p12 = scmp.ge.s32.totalorder %s2788_s21, 4  }
 0x9f5   : > { %s2792_s30 = smov %s2789_s6 }
 0x9f6   :  { %37 = sbr.rel (!%p35_p12) target bundleno = 26 (0x1a), region = 203 }
 0x9fb   :  { %1493 = vsyncpa [#allocation3], 1 }
 0x9fc   :  { %1495 = vsyncpa [#allocation3 + $0x1], 1 }
 0x9fd   :  { %1496 = vsyncpa [#allocation6], 1 }
 0x9fe   :  { %1497 = vsyncpa [#allocation9], 1 }
 0x9ff   :  { %1499 = vsyncpa [#allocation9 + $0x1], 1 }
 0xa00   :  { %1500 = vsyncpa [#allocation12], 1 }
 0xa01   :  { %1501 = vsyncpa [#allocation4], 1 }
 0xa02   :  { %1503 = vsyncpa [#allocation4 + $0x1], 1 }
 0xa03   :  { %1504 = vsyncpa [#allocation15], 1 }

</bundles_post_ra>
